<compile_context>
chip_gen: v6e
topology: v6e:2x2x1
jax: 0.10.0
libtpu: 0.0.40
codegen_flags: <defaults>
</compile_context>

<pallas_src>
import math

import jax
import jax.numpy as jnp
from jax import lax
from jax.experimental import pallas as pl
from jax.experimental.pallas import tpu as pltpu

OUT_PAD = 128  # lane-dense padded width for the final linear2 output


# ----------------------------------------------------------------------------- #
# Fused kernel: bidirectional LSTM final states + context attention + linear2.
# One grid step processes TB sentences (R = TB*E edge rows) at once.
# ----------------------------------------------------------------------------- #
def context_aware_kernel(x_ref, whh_ref, w1_ref, w2a_ref, w2b_ref, b2_ref,
                         mask_ref, out_ref):
    # x_ref   : (L, R, 8U)  pre-activations (input part + biases), gate-major lanes
    #                       [i_f|i_b|f_f|f_b|g_f|g_b|o_f|o_b]; fwd lanes carry
    #                       time k, bwd lanes carry time L-1-k (done in wrapper)
    # whh_ref : (2U, 8U)    recurrent weights, rows = [h_fwd | h_bwd], same lanes
    # w1_ref  : (H, H)      linear1 (no bias), applied as x @ w1
    # w2a_ref : (H, 128)    linear2 rows for the sentence vector (lane padded)
    # w2b_ref : (H, 128)    linear2 rows for the context vector  (lane padded)
    # b2_ref  : (1, 128)    linear2 bias (lane padded)
    # mask_ref: (R, R)      additive attention mask (0 same-sentence & not-self, -1e30 else)
    # out_ref : (R, 128)
    L, R, C = x_ref.shape
    U = C // 8
    H = 2 * U

    whh = whh_ref[...]                                           # (2U, 8U), VMEM-resident

    # hoisted constants
    lane = lax.broadcasted_iota(jnp.int32, (1, C), 1)
    g_lane = (lane >= 4 * U) & (lane < 6 * U)                    # tanh-gate lanes

    h = jnp.zeros((R, H), jnp.float32)                           # [h_fwd | h_bwd]
    c = jnp.zeros((R, H), jnp.float32)                           # [c_fwd | c_bwd]

    # L is small & static -> fully unrolled. One recurrent (R,2U)x(2U,8U) dot per
    # step covers both directions & all gates at full 128-lane width; a single
    # full-width sigmoid evaluates every gate (g columns were pre-scaled by 2 in
    # the packed weights so tanh(pre_g) == 2*sigmoid(2*pre_g) - 1).
    for k in range(L):
        pre = jnp.dot(h, whh, preferred_element_type=jnp.float32) + x_ref[k]
        sig = jax.nn.sigmoid(pre)                                # (R, 8U) one EUP push
        gates = jnp.where(g_lane, 2.0 * sig - 1.0, sig)
        i_g = gates[:, 0 * H:1 * H]                              # (R, 2U) = [fwd | bwd]
        f_g = gates[:, 1 * H:2 * H]
        g_g = gates[:, 2 * H:3 * H]
        o_g = gates[:, 3 * H:4 * H]
        c = f_g * c + i_g * g_g                                  # no concats: dense state
        h = o_g * jnp.tanh(c)

    rnn = h                                                      # (R, H) = [h_f(T-1)|h_b(0)]

    # ---- context attention over the other E-1 edges of the same sentence ----- #
    # NOTE: E >= 2 assumed (E == 1 would give an empty context set in PyTorch too).
    tm = jnp.dot(rnn, w1_ref[...], preferred_element_type=jnp.float32)       # (R, H)
    scores = lax.dot_general(tm, rnn, (((1,), (1,)), ((), ())),
                             preferred_element_type=jnp.float32)             # (R, R)
    scores = scores + mask_ref[...]                 # block-diag per sentence, exclude self
    m = jnp.max(scores, axis=-1, keepdims=True)
    p = jnp.exp(scores - m)
    p = p * pl.reciprocal(jnp.sum(p, axis=-1, keepdims=True), approx=True)
    ctx = jnp.dot(p, rnn, preferred_element_type=jnp.float32)                # (R, H)

    # linear2 on [rnn | ctx] done as two dots (no lane concat), lane-dense store.
    out_ref[...] = (jnp.dot(rnn, w2a_ref[...], preferred_element_type=jnp.float32)
                    + jnp.dot(ctx, w2b_ref[...], preferred_element_type=jnp.float32)
                    + b2_ref[...])


# ----------------------------------------------------------------------------- #
# Parameter repacking (PyTorch layout -> kernel layout)
# ----------------------------------------------------------------------------- #
def _pack_params(params, emb_dim, n_out):
    U = params['whh'].shape[-1]
    H = 2 * U
    C = 8 * U
    wih = params['wih']                         # (2, 4U, D), rows per dir = [i; f; g; o]
    whh = params['whh']                         # (2, 4U, U)
    bias = params['b_ih'] + params['b_hh']      # (2, 4U) folded biases

    # Gate-major, direction-interleaved lane layout: [i_f|i_b|f_f|f_b|g_f|g_b|o_f|o_b]
    wih_blocks, b_blocks = [], []
    whh_packed = jnp.zeros((H, C), jnp.float32)
    for g in range(4):
        for d in range(2):
            rows = slice(g * U, (g + 1) * U)
            wih_blocks.append(wih[d, rows, :])                       # (U, D)
            b_blocks.append(bias[d, rows])                           # (U,)
            col = (2 * g + d) * U
            whh_packed = whh_packed.at[d * U:(d + 1) * U, col:col + U].set(
                whh[d, rows, :].T)
    wih_all = jnp.concatenate(wih_blocks, axis=0).T                  # (D, 8U)
    b_all = jnp.concatenate(b_blocks, axis=0)                        # (8U,)

    # Fold the tanh-as-sigmoid rescale (tanh(x) = 2*sigmoid(2x) - 1) into g columns.
    col_idx = jnp.arange(C)
    col_scale = jnp.where((col_idx >= 4 * U) & (col_idx < 6 * U), 2.0, 1.0)
    wih_all = wih_all * col_scale
    whh_packed = whh_packed * col_scale
    b_all = b_all * col_scale

    # Fold the input-to-hidden projection into the embedding tables
    # (project-then-gather == gather-then-project for a linear map).
    word_proj = jnp.dot(params['word_emb'], wih_all[:emb_dim])       # (vocab, 8U)
    pos_proj = jnp.dot(params['pos_emb'], wih_all[emb_dim:])         # (4, 8U)

    # linear1 / linear2 (nn.Linear stores (out, in); we apply x @ W.T)
    w1 = params['w1'].T                                              # (H, H)
    w2a = jnp.zeros((H, OUT_PAD), jnp.float32).at[:, :n_out].set(params['w2'][:, :H].T)
    w2b = jnp.zeros((H, OUT_PAD), jnp.float32).at[:, :n_out].set(params['w2'][:, H:].T)
    b2 = jnp.zeros((1, OUT_PAD), jnp.float32).at[0, :n_out].set(params['b2'])
    return dict(word_proj=word_proj, pos_proj=pos_proj, b_all=b_all,
                whh=whh_packed, w1=w1, w2a=w2a, w2b=w2b, b2=b2)


def _choose_tb(B, E, target_rows=128):
    """Sentences per grid step: TB*E >= ~128 rows when B allows, TB*E % 8 == 0."""
    m0 = 8 // math.gcd(E, 8)                      # smallest granule with TB*E % 8 == 0
    want = max(1, min(B, -(-target_rows // E)))   # ceil(target/E), capped at B
    return m0 * (-(-want // m0))


# ----------------------------------------------------------------------------- #
# Wrapper: embedding gathers on projected tables + pallas_call
# ----------------------------------------------------------------------------- #
def context_aware_forward(sentence_input, entity_markers, params):
    """sentence_input: (B, L) int32, entity_markers: (B, E, L) int32 in [0, 4)."""
    B, L = sentence_input.shape
    E = entity_markers.shape[1]
    emb_dim = params['word_emb'].shape[-1]
    n_out = params['w2'].shape[0]
    U = params['whh'].shape[-1]
    C = 8 * U

    pk = _pack_params(params, emb_dim, n_out)

    TB = _choose_tb(B, E)
    B_pad = -(-B // TB) * TB
    R = TB * E
    num_blocks = B_pad // TB

    # Gathers on the pre-projected tables -> lane-dense (..., 8U) pre-activations.
    xw = pk['word_proj'][sentence_input]                      # (B, L, 8U)
    xp = pk['pos_proj'][entity_markers]                       # (B, E, L, 8U)
    x_all = xw[:, None, :, :] + xp + pk['b_all']              # (B, E, L, 8U)

    # Fold the backward direction's time reversal into the staged input so the
    # kernel's per-step read is a single contiguous leading-axis index.
    fwd_lane = (jnp.arange(C) // U) % 2 == 0                  # fwd/bwd lane interleave
    x_comb = jnp.where(fwd_lane, x_all, jnp.flip(x_all, axis=2))
    x_comb = jnp.pad(x_comb, ((0, B_pad - B), (0, 0), (0, 0), (0, 0)))
    x_comb = jnp.transpose(x_comb, (2, 0, 1, 3)).reshape(L, B_pad * E, C)  # timestep-major

    # Additive attention mask: attend only to other edges of the SAME sentence.
    bid = jnp.arange(R) // E
    same = bid[:, None] == bid[None, :]
    not_self = ~jnp.eye(R, dtype=bool)
    attn_mask = jnp.where(same & not_self, 0.0, -1e30).astype(jnp.float32)

    out_padded = pl.pallas_call(
        context_aware_kernel,
        out_shape=jax.ShapeDtypeStruct((B_pad * E, OUT_PAD), jnp.float32),
        grid=(num_blocks,),
        in_specs=[
            pl.BlockSpec((L, R, C), lambda b: (0, b, 0)),      # streamed pre-activations
            pl.BlockSpec(pk['whh'].shape, lambda b: (0, 0)),   # weights stay VMEM-resident
            pl.BlockSpec(pk['w1'].shape, lambda b: (0, 0)),
            pl.BlockSpec(pk['w2a'].shape, lambda b: (0, 0)),
            pl.BlockSpec(pk['w2b'].shape, lambda b: (0, 0)),
            pl.BlockSpec(pk['b2'].shape, lambda b: (0, 0)),
            pl.BlockSpec((R, R), lambda b: (0, 0)),
        ],
        out_specs=pl.BlockSpec((R, OUT_PAD), lambda b: (b, 0)),
        compiler_params=pltpu.CompilerParams(
            dimension_semantics=("parallel",),   # megacore over batch blocks (v7x)
        ),
    )(x_comb, pk['whh'], pk['w1'], pk['w2a'], pk['w2b'], pk['b2'], attn_mask)

    return out_padded[:B * E, :n_out]


# ----------------------------------------------------------------------------- #
# Deterministic synthetic parameters + example run
# ----------------------------------------------------------------------------- #
if __name__ == "__main__":
    B = 2                                     # batch
    max_num_nodes = 3
    E = max_num_nodes * (max_num_nodes - 1)   # MAX_EDGES_PER_GRAPH = 6
    L = 8                                     # max_sent_len
    vocab, emb_dim = 20, 16                   # embeddings.shape
    pos_dim = 8                               # p['position_emb']
    U = 16                                    # p['units1']
    n_out = 5
    D = emb_dim + pos_dim
    H = 2 * U

    key = jax.random.PRNGKey(0)
    ks = jax.random.split(key, 12)

    word_emb = jax.random.normal(ks[0], (vocab, emb_dim), jnp.float32) * 0.5
    word_emb = word_emb.at[0].set(0.0)        # padding_idx = 0, frozen
    pos_emb = jax.random.normal(ks[1], (4, pos_dim), jnp.float32) * 0.5

    params = dict(
        word_emb=word_emb,
        pos_emb=pos_emb,
        # PyTorch nn.LSTM layout: per direction, rows are [i, f, g, o] gate blocks.
        wih=jax.random.normal(ks[2], (2, 4 * U, D), jnp.float32) * 0.1,
        whh=jax.random.normal(ks[3], (2, 4 * U, U), jnp.float32) * 0.1,
        b_ih=jax.random.normal(ks[4], (2, 4 * U), jnp.float32) * 0.1,
        b_hh=jax.random.normal(ks[5], (2, 4 * U), jnp.float32) * 0.1,
        # nn.Linear layout (out_features, in_features)
        w1=jax.random.normal(ks[6], (H, H), jnp.float32) * 0.1,      # linear1, no bias
        w2=jax.random.normal(ks[7], (n_out, 2 * H), jnp.float32) * 0.1,
        b2=jax.random.normal(ks[8], (n_out,), jnp.float32) * 0.1,
    )

    sentence_input = jax.random.randint(ks[9], (B, L), 1, vocab, dtype=jnp.int32)
    entity_markers = jax.random.randint(ks[10], (B, E, L), 0, 4, dtype=jnp.int32)

    out = jax.jit(context_aware_forward)(sentence_input, entity_markers, params)
    out = jax.block_until_ready(out)

    assert out.shape == (B * E, n_out), out.shape
    assert bool(jnp.all(jnp.isfinite(out)))
    print("KERNEL_OK")
</pallas_src>

<mosaic_0001>
module attributes {stable_mosaic.version = 11 : i64} {
  func.func @context_aware_kernel(%arg0: i32, %arg1: memref<8x24x128xf32, #tpu.memory_space<vmem>>, %arg2: memref<32x128xf32, #tpu.memory_space<vmem>>, %arg3: memref<32x32xf32, #tpu.memory_space<vmem>>, %arg4: memref<32x128xf32, #tpu.memory_space<vmem>>, %arg5: memref<32x128xf32, #tpu.memory_space<vmem>>, %arg6: memref<1x128xf32, #tpu.memory_space<vmem>>, %arg7: memref<24x24xf32, #tpu.memory_space<vmem>>, %arg8: memref<24x128xf32, #tpu.memory_space<vmem>>) attributes {dimension_semantics = [#tpu.dimension_semantics<parallel>], iteration_bounds = array<i64: 1>, scalar_prefetch = 0 : i64, scratch_operands = 0 : i64, tpu.core_type = #tpu.core_type<tc>, window_params = [{transform_indices = @transform_0, window_bounds = array<i64: 8, 24, 128>}, {pipeline_mode = #tpu.pipeline_mode<synchronous>, transform_indices = @transform_1, window_bounds = array<i64: 32, 128>}, {pipeline_mode = #tpu.pipeline_mode<synchronous>, transform_indices = @transform_2, window_bounds = array<i64: 32, 32>}, {pipeline_mode = #tpu.pipeline_mode<synchronous>, transform_indices = @transform_3, window_bounds = array<i64: 32, 128>}, {pipeline_mode = #tpu.pipeline_mode<synchronous>, transform_indices = @transform_4, window_bounds = array<i64: 32, 128>}, {pipeline_mode = #tpu.pipeline_mode<synchronous>, transform_indices = @transform_5, window_bounds = array<i64: 1, 128>}, {pipeline_mode = #tpu.pipeline_mode<synchronous>, transform_indices = @transform_6, window_bounds = array<i64: 24, 24>}, {transform_indices = @transform_7, window_bounds = array<i64: 24, 128>}]} {
    %c0 = arith.constant 0 : index
    %c0_0 = arith.constant 0 : index
    %0 = vector.load %arg2[%c0, %c0_0] : memref<32x128xf32, #tpu.memory_space<vmem>>, vector<32x128xf32>
    %1 = tpu.iota {dimensions = array<i32: 1>} : vector<1x128xi32>
    %c64_i32 = arith.constant 64 : i32
    %2 = vector.broadcast %c64_i32 : i32 to vector<1x128xi32>
    %3 = arith.cmpi sge, %1, %2 : vector<1x128xi32>
    %c96_i32 = arith.constant 96 : i32
    %4 = vector.broadcast %c96_i32 : i32 to vector<1x128xi32>
    %5 = arith.cmpi slt, %1, %4 : vector<1x128xi32>
    %6 = arith.andi %3, %5 : vector<1x128xi1>
    %cst = arith.constant 0.000000e+00 : f32
    %7 = vector.broadcast %cst : f32 to vector<24x32xf32>
    %cst_1 = arith.constant 0.000000e+00 : f32
    %8 = vector.broadcast %cst_1 : f32 to vector<24x32xf32>
    %cst_2 = arith.constant dense<0.000000e+00> : vector<24x128xf32>
    %9 = tpu.matmul %7, %0, %cst_2 {dimension_numbers = #tpu.dot_dimension_numbers<[1], [0], [0], [1], [0, 0, 1, 1], [], []>} : vector<24x32xf32>, vector<32x128xf32>, vector<24x128xf32> -> vector<24x128xf32>
    %c0_3 = arith.constant 0 : index
    %c0_4 = arith.constant 0 : index
    %c0_5 = arith.constant 0 : index
    %10 = vector.load %arg1[%c0_3, %c0_4, %c0_5] : memref<8x24x128xf32, #tpu.memory_space<vmem>>, vector<1x24x128xf32>
    %11 = vector.shape_cast %10 : vector<1x24x128xf32> to vector<24x128xf32>
    %12 = arith.addf %9, %11 : vector<24x128xf32>
    %13 = arith.negf %12 : vector<24x128xf32>
    %14 = math.exp %13 : vector<24x128xf32>
    %cst_6 = arith.constant 1.000000e+00 : f32
    %15 = vector.broadcast %cst_6 : f32 to vector<24x128xf32>
    %16 = arith.addf %15, %14 : vector<24x128xf32>
    %17 = arith.divf %15, %16 : vector<24x128xf32>
    %cst_7 = arith.constant 2.000000e+00 : f32
    %18 = vector.broadcast %cst_7 : f32 to vector<24x128xf32>
    %19 = arith.mulf %18, %17 : vector<24x128xf32>
    %cst_8 = arith.constant 1.000000e+00 : f32
    %20 = vector.broadcast %cst_8 : f32 to vector<24x128xf32>
    %21 = arith.subf %19, %20 : vector<24x128xf32>
    %22 = vector.shape_cast %6 : vector<1x128xi1> to vector<1x128xi1>
    %23 = vector.broadcast %22 : vector<1x128xi1> to vector<24x128xi1>
    %24 = arith.select %23, %21, %17 : vector<24x128xi1>, vector<24x128xf32>
    %25 = vector.extract_strided_slice %24 {offsets = [0, 0], sizes = [24, 32], strides = [1, 1]} : vector<24x128xf32> to vector<24x32xf32>
    %26 = vector.extract_strided_slice %24 {offsets = [0, 32], sizes = [24, 32], strides = [1, 1]} : vector<24x128xf32> to vector<24x32xf32>
    %27 = vector.extract_strided_slice %24 {offsets = [0, 64], sizes = [24, 32], strides = [1, 1]} : vector<24x128xf32> to vector<24x32xf32>
    %28 = vector.extract_strided_slice %24 {offsets = [0, 96], sizes = [24, 32], strides = [1, 1]} : vector<24x128xf32> to vector<24x32xf32>
    %29 = arith.mulf %26, %8 : vector<24x32xf32>
    %30 = arith.mulf %25, %27 : vector<24x32xf32>
    %31 = arith.addf %29, %30 : vector<24x32xf32>
    %32 = math.tanh %31 : vector<24x32xf32>
    %33 = arith.mulf %28, %32 : vector<24x32xf32>
    %cst_9 = arith.constant dense<0.000000e+00> : vector<24x128xf32>
    %34 = tpu.matmul %33, %0, %cst_9 {dimension_numbers = #tpu.dot_dimension_numbers<[1], [0], [0], [1], [0, 0, 1, 1], [], []>} : vector<24x32xf32>, vector<32x128xf32>, vector<24x128xf32> -> vector<24x128xf32>
    %c1 = arith.constant 1 : index
    %c0_10 = arith.constant 0 : index
    %c0_11 = arith.constant 0 : index
    %35 = vector.load %arg1[%c1, %c0_10, %c0_11] : memref<8x24x128xf32, #tpu.memory_space<vmem>>, vector<1x24x128xf32>
    %36 = vector.shape_cast %35 : vector<1x24x128xf32> to vector<24x128xf32>
    %37 = arith.addf %34, %36 : vector<24x128xf32>
    %38 = arith.negf %37 : vector<24x128xf32>
    %39 = math.exp %38 : vector<24x128xf32>
    %cst_12 = arith.constant 1.000000e+00 : f32
    %40 = vector.broadcast %cst_12 : f32 to vector<24x128xf32>
    %41 = arith.addf %40, %39 : vector<24x128xf32>
    %42 = arith.divf %40, %41 : vector<24x128xf32>
    %cst_13 = arith.constant 2.000000e+00 : f32
    %43 = vector.broadcast %cst_13 : f32 to vector<24x128xf32>
    %44 = arith.mulf %43, %42 : vector<24x128xf32>
    %cst_14 = arith.constant 1.000000e+00 : f32
    %45 = vector.broadcast %cst_14 : f32 to vector<24x128xf32>
    %46 = arith.subf %44, %45 : vector<24x128xf32>
    %47 = vector.shape_cast %6 : vector<1x128xi1> to vector<1x128xi1>
    %48 = vector.broadcast %47 : vector<1x128xi1> to vector<24x128xi1>
    %49 = arith.select %48, %46, %42 : vector<24x128xi1>, vector<24x128xf32>
    %50 = vector.extract_strided_slice %49 {offsets = [0, 0], sizes = [24, 32], strides = [1, 1]} : vector<24x128xf32> to vector<24x32xf32>
    %51 = vector.extract_strided_slice %49 {offsets = [0, 32], sizes = [24, 32], strides = [1, 1]} : vector<24x128xf32> to vector<24x32xf32>
    %52 = vector.extract_strided_slice %49 {offsets = [0, 64], sizes = [24, 32], strides = [1, 1]} : vector<24x128xf32> to vector<24x32xf32>
    %53 = vector.extract_strided_slice %49 {offsets = [0, 96], sizes = [24, 32], strides = [1, 1]} : vector<24x128xf32> to vector<24x32xf32>
    %54 = arith.mulf %51, %31 : vector<24x32xf32>
    %55 = arith.mulf %50, %52 : vector<24x32xf32>
    %56 = arith.addf %54, %55 : vector<24x32xf32>
    %57 = math.tanh %56 : vector<24x32xf32>
    %58 = arith.mulf %53, %57 : vector<24x32xf32>
    %cst_15 = arith.constant dense<0.000000e+00> : vector<24x128xf32>
    %59 = tpu.matmul %58, %0, %cst_15 {dimension_numbers = #tpu.dot_dimension_numbers<[1], [0], [0], [1], [0, 0, 1, 1], [], []>} : vector<24x32xf32>, vector<32x128xf32>, vector<24x128xf32> -> vector<24x128xf32>
    %c2 = arith.constant 2 : index
    %c0_16 = arith.constant 0 : index
    %c0_17 = arith.constant 0 : index
    %60 = vector.load %arg1[%c2, %c0_16, %c0_17] : memref<8x24x128xf32, #tpu.memory_space<vmem>>, vector<1x24x128xf32>
    %61 = vector.shape_cast %60 : vector<1x24x128xf32> to vector<24x128xf32>
    %62 = arith.addf %59, %61 : vector<24x128xf32>
    %63 = arith.negf %62 : vector<24x128xf32>
    %64 = math.exp %63 : vector<24x128xf32>
    %cst_18 = arith.constant 1.000000e+00 : f32
    %65 = vector.broadcast %cst_18 : f32 to vector<24x128xf32>
    %66 = arith.addf %65, %64 : vector<24x128xf32>
    %67 = arith.divf %65, %66 : vector<24x128xf32>
    %cst_19 = arith.constant 2.000000e+00 : f32
    %68 = vector.broadcast %cst_19 : f32 to vector<24x128xf32>
    %69 = arith.mulf %68, %67 : vector<24x128xf32>
    %cst_20 = arith.constant 1.000000e+00 : f32
    %70 = vector.broadcast %cst_20 : f32 to vector<24x128xf32>
    %71 = arith.subf %69, %70 : vector<24x128xf32>
    %72 = vector.shape_cast %6 : vector<1x128xi1> to vector<1x128xi1>
    %73 = vector.broadcast %72 : vector<1x128xi1> to vector<24x128xi1>
    %74 = arith.select %73, %71, %67 : vector<24x128xi1>, vector<24x128xf32>
    %75 = vector.extract_strided_slice %74 {offsets = [0, 0], sizes = [24, 32], strides = [1, 1]} : vector<24x128xf32> to vector<24x32xf32>
    %76 = vector.extract_strided_slice %74 {offsets = [0, 32], sizes = [24, 32], strides = [1, 1]} : vector<24x128xf32> to vector<24x32xf32>
    %77 = vector.extract_strided_slice %74 {offsets = [0, 64], sizes = [24, 32], strides = [1, 1]} : vector<24x128xf32> to vector<24x32xf32>
    %78 = vector.extract_strided_slice %74 {offsets = [0, 96], sizes = [24, 32], strides = [1, 1]} : vector<24x128xf32> to vector<24x32xf32>
    %79 = arith.mulf %76, %56 : vector<24x32xf32>
    %80 = arith.mulf %75, %77 : vector<24x32xf32>
    %81 = arith.addf %79, %80 : vector<24x32xf32>
    %82 = math.tanh %81 : vector<24x32xf32>
    %83 = arith.mulf %78, %82 : vector<24x32xf32>
    %cst_21 = arith.constant dense<0.000000e+00> : vector<24x128xf32>
    %84 = tpu.matmul %83, %0, %cst_21 {dimension_numbers = #tpu.dot_dimension_numbers<[1], [0], [0], [1], [0, 0, 1, 1], [], []>} : vector<24x32xf32>, vector<32x128xf32>, vector<24x128xf32> -> vector<24x128xf32>
    %c3 = arith.constant 3 : index
    %c0_22 = arith.constant 0 : index
    %c0_23 = arith.constant 0 : index
    %85 = vector.load %arg1[%c3, %c0_22, %c0_23] : memref<8x24x128xf32, #tpu.memory_space<vmem>>, vector<1x24x128xf32>
    %86 = vector.shape_cast %85 : vector<1x24x128xf32> to vector<24x128xf32>
    %87 = arith.addf %84, %86 : vector<24x128xf32>
    %88 = arith.negf %87 : vector<24x128xf32>
    %89 = math.exp %88 : vector<24x128xf32>
    %cst_24 = arith.constant 1.000000e+00 : f32
    %90 = vector.broadcast %cst_24 : f32 to vector<24x128xf32>
    %91 = arith.addf %90, %89 : vector<24x128xf32>
    %92 = arith.divf %90, %91 : vector<24x128xf32>
    %cst_25 = arith.constant 2.000000e+00 : f32
    %93 = vector.broadcast %cst_25 : f32 to vector<24x128xf32>
    %94 = arith.mulf %93, %92 : vector<24x128xf32>
    %cst_26 = arith.constant 1.000000e+00 : f32
    %95 = vector.broadcast %cst_26 : f32 to vector<24x128xf32>
    %96 = arith.subf %94, %95 : vector<24x128xf32>
    %97 = vector.shape_cast %6 : vector<1x128xi1> to vector<1x128xi1>
    %98 = vector.broadcast %97 : vector<1x128xi1> to vector<24x128xi1>
    %99 = arith.select %98, %96, %92 : vector<24x128xi1>, vector<24x128xf32>
    %100 = vector.extract_strided_slice %99 {offsets = [0, 0], sizes = [24, 32], strides = [1, 1]} : vector<24x128xf32> to vector<24x32xf32>
    %101 = vector.extract_strided_slice %99 {offsets = [0, 32], sizes = [24, 32], strides = [1, 1]} : vector<24x128xf32> to vector<24x32xf32>
    %102 = vector.extract_strided_slice %99 {offsets = [0, 64], sizes = [24, 32], strides = [1, 1]} : vector<24x128xf32> to vector<24x32xf32>
    %103 = vector.extract_strided_slice %99 {offsets = [0, 96], sizes = [24, 32], strides = [1, 1]} : vector<24x128xf32> to vector<24x32xf32>
    %104 = arith.mulf %101, %81 : vector<24x32xf32>
    %105 = arith.mulf %100, %102 : vector<24x32xf32>
    %106 = arith.addf %104, %105 : vector<24x32xf32>
    %107 = math.tanh %106 : vector<24x32xf32>
    %108 = arith.mulf %103, %107 : vector<24x32xf32>
    %cst_27 = arith.constant dense<0.000000e+00> : vector<24x128xf32>
    %109 = tpu.matmul %108, %0, %cst_27 {dimension_numbers = #tpu.dot_dimension_numbers<[1], [0], [0], [1], [0, 0, 1, 1], [], []>} : vector<24x32xf32>, vector<32x128xf32>, vector<24x128xf32> -> vector<24x128xf32>
    %c4 = arith.constant 4 : index
    %c0_28 = arith.constant 0 : index
    %c0_29 = arith.constant 0 : index
    %110 = vector.load %arg1[%c4, %c0_28, %c0_29] : memref<8x24x128xf32, #tpu.memory_space<vmem>>, vector<1x24x128xf32>
    %111 = vector.shape_cast %110 : vector<1x24x128xf32> to vector<24x128xf32>
    %112 = arith.addf %109, %111 : vector<24x128xf32>
    %113 = arith.negf %112 : vector<24x128xf32>
    %114 = math.exp %113 : vector<24x128xf32>
    %cst_30 = arith.constant 1.000000e+00 : f32
    %115 = vector.broadcast %cst_30 : f32 to vector<24x128xf32>
    %116 = arith.addf %115, %114 : vector<24x128xf32>
    %117 = arith.divf %115, %116 : vector<24x128xf32>
    %cst_31 = arith.constant 2.000000e+00 : f32
    %118 = vector.broadcast %cst_31 : f32 to vector<24x128xf32>
    %119 = arith.mulf %118, %117 : vector<24x128xf32>
    %cst_32 = arith.constant 1.000000e+00 : f32
    %120 = vector.broadcast %cst_32 : f32 to vector<24x128xf32>
    %121 = arith.subf %119, %120 : vector<24x128xf32>
    %122 = vector.shape_cast %6 : vector<1x128xi1> to vector<1x128xi1>
    %123 = vector.broadcast %122 : vector<1x128xi1> to vector<24x128xi1>
    %124 = arith.select %123, %121, %117 : vector<24x128xi1>, vector<24x128xf32>
    %125 = vector.extract_strided_slice %124 {offsets = [0, 0], sizes = [24, 32], strides = [1, 1]} : vector<24x128xf32> to vector<24x32xf32>
    %126 = vector.extract_strided_slice %124 {offsets = [0, 32], sizes = [24, 32], strides = [1, 1]} : vector<24x128xf32> to vector<24x32xf32>
    %127 = vector.extract_strided_slice %124 {offsets = [0, 64], sizes = [24, 32], strides = [1, 1]} : vector<24x128xf32> to vector<24x32xf32>
    %128 = vector.extract_strided_slice %124 {offsets = [0, 96], sizes = [24, 32], strides = [1, 1]} : vector<24x128xf32> to vector<24x32xf32>
    %129 = arith.mulf %126, %106 : vector<24x32xf32>
    %130 = arith.mulf %125, %127 : vector<24x32xf32>
    %131 = arith.addf %129, %130 : vector<24x32xf32>
    %132 = math.tanh %131 : vector<24x32xf32>
    %133 = arith.mulf %128, %132 : vector<24x32xf32>
    %cst_33 = arith.constant dense<0.000000e+00> : vector<24x128xf32>
    %134 = tpu.matmul %133, %0, %cst_33 {dimension_numbers = #tpu.dot_dimension_numbers<[1], [0], [0], [1], [0, 0, 1, 1], [], []>} : vector<24x32xf32>, vector<32x128xf32>, vector<24x128xf32> -> vector<24x128xf32>
    %c5 = arith.constant 5 : index
    %c0_34 = arith.constant 0 : index
    %c0_35 = arith.constant 0 : index
    %135 = vector.load %arg1[%c5, %c0_34, %c0_35] : memref<8x24x128xf32, #tpu.memory_space<vmem>>, vector<1x24x128xf32>
    %136 = vector.shape_cast %135 : vector<1x24x128xf32> to vector<24x128xf32>
    %137 = arith.addf %134, %136 : vector<24x128xf32>
    %138 = arith.negf %137 : vector<24x128xf32>
    %139 = math.exp %138 : vector<24x128xf32>
    %cst_36 = arith.constant 1.000000e+00 : f32
    %140 = vector.broadcast %cst_36 : f32 to vector<24x128xf32>
    %141 = arith.addf %140, %139 : vector<24x128xf32>
    %142 = arith.divf %140, %141 : vector<24x128xf32>
    %cst_37 = arith.constant 2.000000e+00 : f32
    %143 = vector.broadcast %cst_37 : f32 to vector<24x128xf32>
    %144 = arith.mulf %143, %142 : vector<24x128xf32>
    %cst_38 = arith.constant 1.000000e+00 : f32
    %145 = vector.broadcast %cst_38 : f32 to vector<24x128xf32>
    %146 = arith.subf %144, %145 : vector<24x128xf32>
    %147 = vector.shape_cast %6 : vector<1x128xi1> to vector<1x128xi1>
    %148 = vector.broadcast %147 : vector<1x128xi1> to vector<24x128xi1>
    %149 = arith.select %148, %146, %142 : vector<24x128xi1>, vector<24x128xf32>
    %150 = vector.extract_strided_slice %149 {offsets = [0, 0], sizes = [24, 32], strides = [1, 1]} : vector<24x128xf32> to vector<24x32xf32>
    %151 = vector.extract_strided_slice %149 {offsets = [0, 32], sizes = [24, 32], strides = [1, 1]} : vector<24x128xf32> to vector<24x32xf32>
    %152 = vector.extract_strided_slice %149 {offsets = [0, 64], sizes = [24, 32], strides = [1, 1]} : vector<24x128xf32> to vector<24x32xf32>
    %153 = vector.extract_strided_slice %149 {offsets = [0, 96], sizes = [24, 32], strides = [1, 1]} : vector<24x128xf32> to vector<24x32xf32>
    %154 = arith.mulf %151, %131 : vector<24x32xf32>
    %155 = arith.mulf %150, %152 : vector<24x32xf32>
    %156 = arith.addf %154, %155 : vector<24x32xf32>
    %157 = math.tanh %156 : vector<24x32xf32>
    %158 = arith.mulf %153, %157 : vector<24x32xf32>
    %cst_39 = arith.constant dense<0.000000e+00> : vector<24x128xf32>
    %159 = tpu.matmul %158, %0, %cst_39 {dimension_numbers = #tpu.dot_dimension_numbers<[1], [0], [0], [1], [0, 0, 1, 1], [], []>} : vector<24x32xf32>, vector<32x128xf32>, vector<24x128xf32> -> vector<24x128xf32>
    %c6 = arith.constant 6 : index
    %c0_40 = arith.constant 0 : index
    %c0_41 = arith.constant 0 : index
    %160 = vector.load %arg1[%c6, %c0_40, %c0_41] : memref<8x24x128xf32, #tpu.memory_space<vmem>>, vector<1x24x128xf32>
    %161 = vector.shape_cast %160 : vector<1x24x128xf32> to vector<24x128xf32>
    %162 = arith.addf %159, %161 : vector<24x128xf32>
    %163 = arith.negf %162 : vector<24x128xf32>
    %164 = math.exp %163 : vector<24x128xf32>
    %cst_42 = arith.constant 1.000000e+00 : f32
    %165 = vector.broadcast %cst_42 : f32 to vector<24x128xf32>
    %166 = arith.addf %165, %164 : vector<24x128xf32>
    %167 = arith.divf %165, %166 : vector<24x128xf32>
    %cst_43 = arith.constant 2.000000e+00 : f32
    %168 = vector.broadcast %cst_43 : f32 to vector<24x128xf32>
    %169 = arith.mulf %168, %167 : vector<24x128xf32>
    %cst_44 = arith.constant 1.000000e+00 : f32
    %170 = vector.broadcast %cst_44 : f32 to vector<24x128xf32>
    %171 = arith.subf %169, %170 : vector<24x128xf32>
    %172 = vector.shape_cast %6 : vector<1x128xi1> to vector<1x128xi1>
    %173 = vector.broadcast %172 : vector<1x128xi1> to vector<24x128xi1>
    %174 = arith.select %173, %171, %167 : vector<24x128xi1>, vector<24x128xf32>
    %175 = vector.extract_strided_slice %174 {offsets = [0, 0], sizes = [24, 32], strides = [1, 1]} : vector<24x128xf32> to vector<24x32xf32>
    %176 = vector.extract_strided_slice %174 {offsets = [0, 32], sizes = [24, 32], strides = [1, 1]} : vector<24x128xf32> to vector<24x32xf32>
    %177 = vector.extract_strided_slice %174 {offsets = [0, 64], sizes = [24, 32], strides = [1, 1]} : vector<24x128xf32> to vector<24x32xf32>
    %178 = vector.extract_strided_slice %174 {offsets = [0, 96], sizes = [24, 32], strides = [1, 1]} : vector<24x128xf32> to vector<24x32xf32>
    %179 = arith.mulf %176, %156 : vector<24x32xf32>
    %180 = arith.mulf %175, %177 : vector<24x32xf32>
    %181 = arith.addf %179, %180 : vector<24x32xf32>
    %182 = math.tanh %181 : vector<24x32xf32>
    %183 = arith.mulf %178, %182 : vector<24x32xf32>
    %cst_45 = arith.constant dense<0.000000e+00> : vector<24x128xf32>
    %184 = tpu.matmul %183, %0, %cst_45 {dimension_numbers = #tpu.dot_dimension_numbers<[1], [0], [0], [1], [0, 0, 1, 1], [], []>} : vector<24x32xf32>, vector<32x128xf32>, vector<24x128xf32> -> vector<24x128xf32>
    %c7 = arith.constant 7 : index
    %c0_46 = arith.constant 0 : index
    %c0_47 = arith.constant 0 : index
    %185 = vector.load %arg1[%c7, %c0_46, %c0_47] : memref<8x24x128xf32, #tpu.memory_space<vmem>>, vector<1x24x128xf32>
    %186 = vector.shape_cast %185 : vector<1x24x128xf32> to vector<24x128xf32>
    %187 = arith.addf %184, %186 : vector<24x128xf32>
    %188 = arith.negf %187 : vector<24x128xf32>
    %189 = math.exp %188 : vector<24x128xf32>
    %cst_48 = arith.constant 1.000000e+00 : f32
    %190 = vector.broadcast %cst_48 : f32 to vector<24x128xf32>
    %191 = arith.addf %190, %189 : vector<24x128xf32>
    %192 = arith.divf %190, %191 : vector<24x128xf32>
    %cst_49 = arith.constant 2.000000e+00 : f32
    %193 = vector.broadcast %cst_49 : f32 to vector<24x128xf32>
    %194 = arith.mulf %193, %192 : vector<24x128xf32>
    %cst_50 = arith.constant 1.000000e+00 : f32
    %195 = vector.broadcast %cst_50 : f32 to vector<24x128xf32>
    %196 = arith.subf %194, %195 : vector<24x128xf32>
    %197 = vector.shape_cast %6 : vector<1x128xi1> to vector<1x128xi1>
    %198 = vector.broadcast %197 : vector<1x128xi1> to vector<24x128xi1>
    %199 = arith.select %198, %196, %192 : vector<24x128xi1>, vector<24x128xf32>
    %200 = vector.extract_strided_slice %199 {offsets = [0, 0], sizes = [24, 32], strides = [1, 1]} : vector<24x128xf32> to vector<24x32xf32>
    %201 = vector.extract_strided_slice %199 {offsets = [0, 32], sizes = [24, 32], strides = [1, 1]} : vector<24x128xf32> to vector<24x32xf32>
    %202 = vector.extract_strided_slice %199 {offsets = [0, 64], sizes = [24, 32], strides = [1, 1]} : vector<24x128xf32> to vector<24x32xf32>
    %203 = vector.extract_strided_slice %199 {offsets = [0, 96], sizes = [24, 32], strides = [1, 1]} : vector<24x128xf32> to vector<24x32xf32>
    %204 = arith.mulf %201, %181 : vector<24x32xf32>
    %205 = arith.mulf %200, %202 : vector<24x32xf32>
    %206 = arith.addf %204, %205 : vector<24x32xf32>
    %207 = math.tanh %206 : vector<24x32xf32>
    %208 = arith.mulf %203, %207 : vector<24x32xf32>
    %c0_51 = arith.constant 0 : index
    %c0_52 = arith.constant 0 : index
    %209 = vector.load %arg3[%c0_51, %c0_52] : memref<32x32xf32, #tpu.memory_space<vmem>>, vector<32x32xf32>
    %cst_53 = arith.constant dense<0.000000e+00> : vector<24x32xf32>
    %210 = tpu.matmul %208, %209, %cst_53 {dimension_numbers = #tpu.dot_dimension_numbers<[1], [0], [0], [1], [0, 0, 1, 1], [], []>} : vector<24x32xf32>, vector<32x32xf32>, vector<24x32xf32> -> vector<24x32xf32>
    %cst_54 = arith.constant dense<0.000000e+00> : vector<24x24xf32>
    %211 = tpu.matmul %210, %208, %cst_54 {dimension_numbers = #tpu.dot_dimension_numbers<[1], [1], [0], [0], [0, 0, 1, 0], [], []>} : vector<24x32xf32>, vector<24x32xf32>, vector<24x24xf32> -> vector<24x24xf32>
    %c0_55 = arith.constant 0 : index
    %c0_56 = arith.constant 0 : index
    %212 = vector.load %arg7[%c0_55, %c0_56] : memref<24x24xf32, #tpu.memory_space<vmem>>, vector<24x24xf32>
    %213 = arith.addf %211, %212 : vector<24x24xf32>
    %cst_57 = arith.constant dense<0xFF800000> : vector<24xf32>
    %214 = vector.multi_reduction <maximumf>, %213, %cst_57 [1] : vector<24x24xf32> to vector<24xf32>
    %215 = vector.shape_cast %214 : vector<24xf32> to vector<24x1xf32>
    %216 = vector.broadcast %215 : vector<24x1xf32> to vector<24x24xf32>
    %217 = arith.subf %213, %216 : vector<24x24xf32>
    %218 = math.exp %217 : vector<24x24xf32>
    %cst_58 = arith.constant dense<0.000000e+00> : vector<24xf32>
    %219 = vector.multi_reduction <add>, %218, %cst_58 [1] : vector<24x24xf32> to vector<24xf32>
    %220 = vector.shape_cast %219 : vector<24xf32> to vector<24x1xf32>
    %221 = tpu.reciprocal %220 {approx = true} : vector<24x1xf32> -> vector<24x1xf32>
    %222 = vector.broadcast %221 : vector<24x1xf32> to vector<24x24xf32>
    %223 = arith.mulf %218, %222 : vector<24x24xf32>
    %cst_59 = arith.constant dense<0.000000e+00> : vector<24x32xf32>
    %224 = tpu.matmul %223, %208, %cst_59 {dimension_numbers = #tpu.dot_dimension_numbers<[1], [0], [0], [1], [0, 0, 1, 1], [], []>} : vector<24x24xf32>, vector<24x32xf32>, vector<24x32xf32> -> vector<24x32xf32>
    %c0_60 = arith.constant 0 : index
    %c0_61 = arith.constant 0 : index
    %225 = vector.load %arg4[%c0_60, %c0_61] : memref<32x128xf32, #tpu.memory_space<vmem>>, vector<32x128xf32>
    %cst_62 = arith.constant dense<0.000000e+00> : vector<24x128xf32>
    %226 = tpu.matmul %208, %225, %cst_62 {dimension_numbers = #tpu.dot_dimension_numbers<[1], [0], [0], [1], [0, 0, 1, 1], [], []>} : vector<24x32xf32>, vector<32x128xf32>, vector<24x128xf32> -> vector<24x128xf32>
    %c0_63 = arith.constant 0 : index
    %c0_64 = arith.constant 0 : index
    %227 = vector.load %arg5[%c0_63, %c0_64] : memref<32x128xf32, #tpu.memory_space<vmem>>, vector<32x128xf32>
    %cst_65 = arith.constant dense<0.000000e+00> : vector<24x128xf32>
    %228 = tpu.matmul %224, %227, %cst_65 {dimension_numbers = #tpu.dot_dimension_numbers<[1], [0], [0], [1], [0, 0, 1, 1], [], []>} : vector<24x32xf32>, vector<32x128xf32>, vector<24x128xf32> -> vector<24x128xf32>
    %229 = arith.addf %226, %228 : vector<24x128xf32>
    %c0_66 = arith.constant 0 : index
    %c0_67 = arith.constant 0 : index
    %230 = vector.load %arg6[%c0_66, %c0_67] : memref<1x128xf32, #tpu.memory_space<vmem>>, vector<1x128xf32>
    %231 = vector.broadcast %230 : vector<1x128xf32> to vector<24x128xf32>
    %232 = arith.addf %229, %231 : vector<24x128xf32>
    %c0_68 = arith.constant 0 : index
    %c0_69 = arith.constant 0 : index
    %233 = vector.load %arg8[%c0_68, %c0_69] : memref<24x128xf32, #tpu.memory_space<vmem>>, vector<24x128xf32>
    tpu.vector_store %arg8[%c0_68, %c0_69], %232 {strides = array<i32>} : memref<24x128xf32, #tpu.memory_space<vmem>>, vector<24x128xf32>,
    return
  }
  func.func @transform_0(%arg0: i32) -> (i32, i32, i32) {
    %c0_i32 = arith.constant 0 : i32
    %c0_i32_0 = arith.constant 0 : i32
    %c0_i32_1 = arith.constant 0 : i32
    return %c0_i32, %arg0, %c0_i32_0 : i32, i32, i32
  }
  func.func @transform_1(%arg0: i32) -> (i32, i32) {
    %c0_i32 = arith.constant 0 : i32
    %c0_i32_0 = arith.constant 0 : i32
    %c0_i32_1 = arith.constant 0 : i32
    return %c0_i32, %c0_i32_0 : i32, i32
  }
  func.func @transform_2(%arg0: i32) -> (i32, i32) {
    %c0_i32 = arith.constant 0 : i32
    %c0_i32_0 = arith.constant 0 : i32
    %c0_i32_1 = arith.constant 0 : i32
    return %c0_i32, %c0_i32_0 : i32, i32
  }
  func.func @transform_3(%arg0: i32) -> (i32, i32) {
    %c0_i32 = arith.constant 0 : i32
    %c0_i32_0 = arith.constant 0 : i32
    %c0_i32_1 = arith.constant 0 : i32
    return %c0_i32, %c0_i32_0 : i32, i32
  }
  func.func @transform_4(%arg0: i32) -> (i32, i32) {
    %c0_i32 = arith.constant 0 : i32
    %c0_i32_0 = arith.constant 0 : i32
    %c0_i32_1 = arith.constant 0 : i32
    return %c0_i32, %c0_i32_0 : i32, i32
  }
  func.func @transform_5(%arg0: i32) -> (i32, i32) {
    %c0_i32 = arith.constant 0 : i32
    %c0_i32_0 = arith.constant 0 : i32
    %c0_i32_1 = arith.constant 0 : i32
    return %c0_i32, %c0_i32_0 : i32, i32
  }
  func.func @transform_6(%arg0: i32) -> (i32, i32) {
    %c0_i32 = arith.constant 0 : i32
    %c0_i32_0 = arith.constant 0 : i32
    %c0_i32_1 = arith.constant 0 : i32
    return %c0_i32, %c0_i32_0 : i32, i32
  }
  func.func @transform_7(%arg0: i32) -> (i32, i32) {
    %c0_i32 = arith.constant 0 : i32
    %c0_i32_0 = arith.constant 0 : i32
    return %arg0, %c0_i32 : i32, i32
  }
}

</mosaic_0001>

<bundles_post_ra>
// kernel: context_aware_forward.1
= control target key start
LH: loop header
LB: loop body
LE: loop exit
PB: predicated region body
PF: predicated region fallthrough
CT: control target
= control target key end

     0   :  { %v2539_v0 = vmov 0.0   ;;  %vm2540_vm0 = vmmov 0   ;;  %v30_v26 = vlaneseq  ;;  %s2541_s15 = smov 64   ;;  %s2542_s16 = smov 32   ;;  %vm38_vm4 = vcmask 261120   ;;  %s3206_s1 = inlined_call_operand.vmem [shape: f32[32,128], index: 1, kind: input, shape index: {}]   ;;  %s3207_s0 = inlined_call_operand.vmem [shape: f32[8,24,128], index: 0, kind: input, shape index: {}]   ;;  %s3208_s2 = inlined_call_operand.vmem [shape: f32[32,32], index: 2, kind: input, shape index: {}]   ;;  %s3209_s6 = inlined_call_operand.vmem [shape: f32[24,24], index: 6, kind: input, shape index: {}]   ;;  %s3210_s4 = inlined_call_operand.vmem [shape: f32[32,128], index: 4, kind: input, shape index: {}]   ;;  %s3211_s3 = inlined_call_operand.vmem [shape: f32[32,128], index: 3, kind: input, shape index: {}]   ;;  %s3212_s5 = inlined_call_operand.vmem [shape: f32[1,128], index: 5, kind: input, shape index: {}]   ;;  %s3213_s7 = inlined_call_operand.vmem [shape: f32[24,128], index: 7, kind: output, shape index: {}]  }
   0x1   :  { %2150 = vmatprep.subr.mxu0 %v2539_v0  ;;  %2367 = vmatprep.subr.mxu1 %v2539_v0  ;;  %v2588_v1 = vld [vmem:[%s3206_s1 + $0x18] sm:$0xff]  ;;  %v2593_v2 = vld [vmem:[%s3206_s1 + $0x10] sm:$0xff]  ;;  %v2602_v3 = vld [vmem:[%s3206_s1 + $0x8] sm:$0xff]  ;;  %vm1632_vm5 = vcmask 195584  }
   0x2   :  { %2151 = vmatpush3.msra.mxu0 %v2588_v1  ;;  %2371 = vmatpush3.msra.mxu1 %v2588_v1  ;;  %v2611_v4 = vld [vmem:[%s3206_s1] sm:$0xff]  ;;  %v37_v6 = vld [vmem:[%s3207_s0 + $0x10] sm:$0xff]  ;;  %v36_v12 = vld [vmem:[%s3207_s0 + $0x8] sm:$0xff]  ;;  %v31_v27 = vand.u32 127, %v30_v26 }
   0x3   :  { %2152 = vmatprep.subr.mxu0 %v2539_v0  ;;  %2368 = vmatprep.subr.mxu1 %v2539_v0  ;;  %v35_v5 = vld [vmem:[%s3207_s0] sm:$0xff] }
   0x4   :  { %2153 = vmatpush3.msra.mxu0 %v2593_v2  ;;  %2372 = vmatpush3.msra.mxu1 %v2593_v2  ;;  %vm32_vm1 = vcmp.ge.s32.totalorder %v31_v27, 64  ;;  %vm33_vm2 = vcmp.lt.s32.totalorder %v31_v27, 96 }
   0x5   :  { %2154 = vmatprep.subr.mxu0 %v2539_v0  ;;  %2369 = vmatprep.subr.mxu1 %v2539_v0  ;;  %vm2659_vm3 = vmand %vm32_vm1, %vm33_vm2 }
   0x6   :  { %2155 = vmatpush3.msra.mxu0 %v2602_v3  ;;  %2373 = vmatpush3.msra.mxu1 %v2602_v3 }
   0x7   :  { %2156 = vmatprep.subr.mxu0 %v2539_v0  ;;  %2370 = vmatprep.subr.mxu1 %v2539_v0 }
   0x8   :  { %2157 = vmatpush3.msra.mxu0 %v2611_v4  ;;  %2374 = vmatpush3.msra.mxu1 %v2611_v4 }
   0x9   :  { %2158 = vmatprep.mubr.msk.f32.mxu0 %vm2540_vm0, %v2539_v0  ;;  %2164 = vmatprep.mubr.msk.f32.mxu1 %vm2540_vm0, %v2539_v0 }
   0xa   :  { %2159 = vmatmul.mubr.f32.vlgmr.msra.gmra.mxu0 %v2539_v0  ;;  %2165 = vmatmul.mubr.f32.vlgmr.msra.gmra.mxu1 %v2539_v0 }
   0xb   :  { %2161 = vmatprep.mubr.msk.f32.mxu0 %vm2540_vm0, %v2539_v0  ;;  %2167 = vmatprep.subr.mxu1 %v2539_v0 }
   0xc   :  { %2168 = vmatpush3.msra.mxu1 %v2588_v1  ;;  %2175 = vmatprep.mubr.msk.f32.mxu1 %vm2540_vm0, %v2539_v0 }
   0xd   :  { %2169 = vmatprep.subr.mxu1 %v2539_v0  ;;  %2184 = vmatprep.subr.mxu0 %v2539_v0 }
   0xe   :  { %2162 = vmatmul.mubr.f32.gmra.mxu0 %v2539_v0  ;;  %2170 = vmatpush3.msra.mxu1 %v2593_v2 }
   0xf   :  { %2171 = vmatprep.subr.mxu1 %v2539_v0  ;;  %2185 = vmatpush3.msra.mxu0 %v2588_v1 }
  0x10   :  { %2172 = vmatpush3.msra.mxu1 %v2602_v3  ;;  %2186 = vmatprep.subr.mxu0 %v2539_v0 }
  0x11   :  { %2173 = vmatprep.subr.mxu1 %v2539_v0  ;;  %2187 = vmatpush3.msra.mxu0 %v2593_v2 }
  0x12   :  { %2174 = vmatpush3.msra.mxu1 %v2611_v4  ;;  %2188 = vmatprep.subr.mxu0 %v2539_v0 }
  0x13   :  { %2189 = vmatpush3.msra.mxu0 %v2602_v3  ;;  %2192 = vmatprep.mubr.msk.f32.mxu0 %vm2540_vm0, %v2539_v0 }
  0x14   :  { %2190 = vmatprep.subr.mxu0 %v2539_v0  ;;  %2201 = vmatprep.subr.mxu1 %v2539_v0 }
  0x15   :  { %2191 = vmatpush3.msra.mxu0 %v2611_v4 }
  0x16   :  { %2218 = vmatprep.subr.mxu0 %v2539_v0 }
  0xca   :  { %v108_v7 = vpop.f32.mrf.mxu0  ;;  %v118_v8 = vpop.f32.mrf.mxu1 }
  0xcb   :  { %v109_v9 = vadd.f32 %v108_v7, %v35_v5  ;;  %v119_v10 = vadd.f32 %v118_v8, %v37_v6 }
  0xcc   :  { %v2160_v11 = vpop.f32.mrf.mxu0  ;;  %v2166_v13 = vpop.f32.mrf.mxu1 }
  0xcd   :  { %v1952_v14 = vmul.f32 -1.442695, %v109_v9  ;;  %v1954_v15 = vmul.f32 -1.442695, %v119_v10  ;;  %v1958_v9 = vld [vmem:[%s3207_s0 + $0x18] sm:$0xff] }
  0xce   :  { %v113_v16 = vpop.f32.mrf.mxu0 }
  0xcf   :  { %2379 = vpow2.f32 %v1952_v14  ;;  %v114_v17 = vadd.f32 %v113_v16, %v36_v12  ;;  %v1959_v14 = vld [vmem:[%s3207_s0 + $0x20] sm:$0xff] }
  0xd0   :  { %2381 = vpow2.f32 %v1954_v15  ;;  %v2163_v18 = vpop.f32.mrf.mxu0 }
  0xd1   :  { %v1953_v19 = vmul.f32 -1.442695, %v114_v17  ;;  %v1960_v18 = vld [vmem:[%s3207_s0 + $0x28] sm:$0xff] }
  0xd3   :  { %2383 = vpow2.f32 %v1953_v19 }
  0xdc   :  { %v2380_v20 = vpop.eup %2379 }
  0xdd   :  { %v2382_v21 = vpop.eup %2381  ;;  %v131_v22 = vadd.f32 1.0, %v2380_v20 }
  0xde   :  { %v133_v23 = vadd.f32 1.0, %v2382_v21 }
  0xdf   :  { %2385 = vrcp.f32 %v131_v22 }
  0xe0   :  { %v2384_v24 = vpop.eup %2383  ;;  %2387 = vrcp.f32 %v133_v23 }
  0xe1   :  { %v132_v25 = vadd.f32 1.0, %v2384_v24 }
  0xe3   :  { %2389 = vrcp.f32 %v132_v25 }
  0xec   :  { %v2386_v28 = vpop.eup %2385 }
  0xed   :  { %v2388_v29 = vpop.eup %2387  ;;  %v140_v30 = vmul.f32 2.0, %v2386_v28 }
  0xee   :  { %v142_v32 = vmul.f32 2.0, %v2388_v29 }
  0xef   :  { %v1955_v33 = vadd.f32 -1.0, %v140_v30 }
  0xf0   :  { %v2390_v34 = vpop.eup %2389  ;;  %v1957_v35 = vadd.f32 -1.0, %v142_v32 }
  0xf1   :  { %v148_v36 = vsel %vm2659_vm3, %v1955_v33, %v2386_v28  ;;  %v141_v37 = vmul.f32 2.0, %v2390_v34 }
  0xf2   :  { %v150_v38 = vsel %vm2659_vm3, %v1957_v35, %v2388_v29  ;;  %157 = vrot.lane.b32.xlu0 %v148_v36, %s2541_s15  ;;  %v151_v47 = vmul.f32 0.0, %v148_v36 }
  0xf3   :  { %161 = vrot.lane.b32.xlu1 %v150_v38, %s2541_s15  ;;  %v1956_v39 = vadd.f32 -1.0, %v141_v37  ;;  %v153_v50 = vmul.f32 0.0, %v150_v38 }
  0xf5   :  { %v149_v40 = vsel %vm2659_vm3, %v1956_v39, %v2390_v34 }
  0xf6   :  { %159 = vrot.lane.b32.xlu0 %v149_v40, %s2541_s15  ;;  %v152_v51 = vmul.f32 0.0, %v149_v40 }
 0x164   :  { %v158_v41 = vpop.permute.xlu0 %157 }
 0x165   :  { %v166_v42 = vmul.f32 %v158_v41, %v148_v36  ;;  %v162_v43 = vpop.permute.xlu1 %161 }
 0x166   :  { %v168_v45 = vmul.f32 %v162_v43, %v150_v38 }
 0x167   :  { %172 = vrot.lane.b32.xlu1 %v166_v42, %s2542_s16 }
 0x168   :  { %v160_v44 = vpop.permute.xlu0 %159 }
 0x169   :  { %v167_v46 = vmul.f32 %v160_v44, %v149_v40 }
 0x16b   :  { %176 = vrot.lane.b32.xlu1 %v168_v45, %s2542_s16  ;;  %174 = vrot.lane.b32.xlu0 %v167_v46, %s2542_s16 }
 0x1d9   :  { %v173_v48 = vpop.permute.xlu1 %172 }
 0x1da   :  { %v2675_v49 = vadd.f32 %v173_v48, %v151_v47 }
 0x1dc   :  { %2391 = vtanh.f32 %v2675_v49 }
 0x1dd   :  { %v177_v52 = vpop.permute.xlu1 %176  ;;  %v175_v53 = vpop.permute.xlu0 %174 }
 0x1de   :  { %v2678_v54 = vadd.f32 %v177_v52, %v153_v50  ;;  %v2680_v55 = vadd.f32 %v175_v53, %v152_v51 }
 0x1e0   :  { %2393 = vtanh.f32 %v2678_v54 }
 0x1e1   :  { %2395 = vtanh.f32 %v2680_v55 }
 0x1e9   :  { %v2392_v56 = vpop.eup %2391 }
 0x1ea   :  { %190 = vrot.lane.b32.xlu0 %v2392_v56, %s2541_s15 }
 0x1ed   :  { %v2394_v57 = vpop.eup %2393 }
 0x1ee   :  { %v2396_v58 = vpop.eup %2395  ;;  %194 = vrot.lane.b32.xlu0 %v2394_v57, %s2541_s15 }
 0x1ef   :  { %192 = vrot.lane.b32.xlu1 %v2396_v58, %s2541_s15 }
 0x25c   :  { %v191_v59 = vpop.permute.xlu0 %190 }
 0x25d   :  { %v199_v60 = vmul.f32 %v191_v59, %v148_v36 }
 0x25f   :  { %209 = vrot.lane.b32.xlu1 %v199_v60, %s2542_s16 }
 0x260   :  { %v195_v61 = vpop.permute.xlu0 %194 }
 0x261   :  { %v193_v62 = vpop.permute.xlu1 %192  ;;  %v201_v63 = vmul.f32 %v195_v61, %v150_v38 }
 0x262   :  { %v200_v5 = vmul.f32 %v193_v62, %v149_v40 }
 0x263   :  { %213 = vrot.lane.b32.xlu1 %v201_v63, %s2542_s16 }
 0x264   :  { %211 = vrot.lane.b32.xlu0 %v200_v5, %s2542_s16 }
 0x2d1   :  { %v210_v6 = vpop.permute.xlu1 %209 }
 0x2d2   :  { %2176 = vmatmul.mubr.msk.f32.vlgmr.msra.gmra.mxu1 %vm38_vm4, %v210_v6 }
 0x2d3   :  { %2178 = vmatprep.mubr.msk.f32.mxu1 %vm2540_vm0, %v2539_v0  ;;  %2202 = vmatpush3.msra.mxu1 %v2588_v1 }
 0x2d4   :  { %2203 = vmatprep.subr.mxu1 %v2539_v0 }
 0x2d5   :  { %2204 = vmatpush3.msra.mxu1 %v2593_v2  ;;  %v214_v8 = vpop.permute.xlu1 %213 }
 0x2d6   :  { %v212_v7 = vpop.permute.xlu0 %211  ;;  %2205 = vmatprep.subr.mxu1 %v2539_v0 }
 0x2d7   :  { %2179 = vmatmul.mubr.msk.f32.gmra.mxu1 %vm38_vm4, %v212_v7 }
 0x2d8   :  { %2181 = vmatprep.mubr.msk.f32.mxu1 %vm2540_vm0, %v2539_v0  ;;  %2206 = vmatpush3.msra.mxu1 %v2602_v3 }
 0x2d9   :  { %2207 = vmatprep.subr.mxu1 %v2539_v0 }
 0x2da   :  { %2208 = vmatpush3.msra.mxu1 %v2611_v4 }
 0x2db   :  { %2182 = vmatmul.mubr.msk.f32.gmra.mxu1 %vm38_vm4, %v214_v8  ;;  %2235 = vmatprep.subr.mxu1 %v2539_v0 }
 0x2dc   :  { %2209 = vmatprep.mubr.msk.f32.mxu1 %vm2540_vm0, %v2539_v0 }
 0x392   :  { %v287_v10 = vpop.f32.mrf.mxu1 }
 0x393   :  { %v288_v11 = vadd.f32 %v1958_v9, %v287_v10 }
 0x394   :  { %v2177_v12 = vpop.f32.mrf.mxu1 }
 0x395   :  { %v1964_v13 = vmul.f32 -1.442695, %v288_v11  ;;  %v1970_v11 = vld [vmem:[%s3207_s0 + $0x30] sm:$0xff] }
 0x397   :  { %2397 = vpow2.f32 %v1964_v13  ;;  %v292_v15 = vpop.f32.mrf.mxu1 }
 0x398   :  { %v293_v16 = vadd.f32 %v1959_v14, %v292_v15 }
 0x399   :  { %v2180_v17 = vpop.f32.mrf.mxu1 }
 0x39a   :  { %v1965_v19 = vmul.f32 -1.442695, %v293_v16  ;;  %v1971_v16 = vld [vmem:[%s3207_s0 + $0x38] sm:$0xff] }
 0x39b   :  { %v297_v20 = vpop.f32.mrf.mxu1 }
 0x39c   :  { %2399 = vpow2.f32 %v1965_v19  ;;  %v298_v21 = vadd.f32 %v1960_v18, %v297_v20  ;;  %v1972_v20 = vld [vmem:[%s3207_s0 + $0x40] sm:$0xff] }
 0x39d   :  { %v2183_v22 = vpop.f32.mrf.mxu1 }
 0x39e   :  { %v1966_v23 = vmul.f32 -1.442695, %v298_v21 }
 0x3a0   :  { %2401 = vpow2.f32 %v1966_v23 }
 0x3a4   :  { %v2398_v24 = vpop.eup %2397 }
 0x3a5   :  { %v310_v25 = vadd.f32 1.0, %v2398_v24 }
 0x3a7   :  { %2403 = vrcp.f32 %v310_v25 }
 0x3a9   :  { %v2400_v26 = vpop.eup %2399 }
 0x3aa   :  { %v311_v27 = vadd.f32 1.0, %v2400_v26 }
 0x3ac   :  { %2405 = vrcp.f32 %v311_v27 }
 0x3ad   :  { %v2402_v28 = vpop.eup %2401 }
 0x3ae   :  { %v312_v29 = vadd.f32 1.0, %v2402_v28 }
 0x3b0   :  { %2407 = vrcp.f32 %v312_v29 }
 0x3b4   :  { %v2404_v30 = vpop.eup %2403 }
 0x3b5   :  { %v319_v32 = vmul.f32 2.0, %v2404_v30 }
 0x3b7   :  { %v1967_v33 = vadd.f32 -1.0, %v319_v32 }
 0x3b9   :  { %v2406_v34 = vpop.eup %2405  ;;  %v325_v35 = vsel %vm2659_vm3, %v1967_v33, %v2404_v30 }
 0x3ba   :  { %334 = vrot.lane.b32.xlu0 %v325_v35, %s2541_s15  ;;  %v320_v36 = vmul.f32 2.0, %v2406_v34  ;;  %v328_v50 = vmul.f32 %v325_v35, %v2675_v49 }
 0x3bc   :  { %v1968_v37 = vadd.f32 -1.0, %v320_v36 }
 0x3bd   :  { %v2408_v38 = vpop.eup %2407 }
 0x3be   :  { %v326_v39 = vsel %vm2659_vm3, %v1968_v37, %v2406_v34  ;;  %v321_v40 = vmul.f32 2.0, %v2408_v38 }
 0x3bf   :  { %336 = vrot.lane.b32.xlu1 %v326_v39, %s2541_s15  ;;  %v329_v53 = vmul.f32 %v326_v39, %v2680_v55 }
 0x3c0   :  { %v1969_v41 = vadd.f32 -1.0, %v321_v40 }
 0x3c2   :  { %v327_v42 = vsel %vm2659_vm3, %v1969_v41, %v2408_v38 }
 0x3c3   :  { %338 = vrot.lane.b32.xlu0 %v327_v42, %s2541_s15  ;;  %v330_v58 = vmul.f32 %v327_v42, %v2678_v54 }
 0x42c   :  { %v335_v43 = vpop.permute.xlu0 %334 }
 0x42d   :  { %v343_v44 = vmul.f32 %v335_v43, %v325_v35 }
 0x42f   :  { %349 = vrot.lane.b32.xlu1 %v343_v44, %s2542_s16 }
 0x431   :  { %v337_v45 = vpop.permute.xlu1 %336 }
 0x432   :  { %v344_v46 = vmul.f32 %v337_v45, %v326_v39 }
 0x434   :  { %351 = vrot.lane.b32.xlu0 %v344_v46, %s2542_s16 }
 0x435   :  { %v339_v47 = vpop.permute.xlu0 %338 }
 0x436   :  { %v345_v48 = vmul.f32 %v339_v47, %v327_v42 }
 0x438   :  { %353 = vrot.lane.b32.xlu1 %v345_v48, %s2542_s16 }
 0x4a1   :  { %v350_v51 = vpop.permute.xlu1 %349 }
 0x4a2   :  { %v2729_v52 = vadd.f32 %v350_v51, %v328_v50 }
 0x4a4   :  { %2409 = vtanh.f32 %v2729_v52 }
 0x4a6   :  { %v352_v56 = vpop.permute.xlu0 %351 }
 0x4a7   :  { %v2733_v57 = vadd.f32 %v352_v56, %v329_v53 }
 0x4a9   :  { %2411 = vtanh.f32 %v2733_v57 }
 0x4aa   :  { %v354_v59 = vpop.permute.xlu1 %353 }
 0x4ab   :  { %v2737_v60 = vadd.f32 %v354_v59, %v330_v58 }
 0x4ad   :  { %2413 = vtanh.f32 %v2737_v60 }
 0x4b1   :  { %v2410_v49 = vpop.eup %2409 }
 0x4b2   :  { %367 = vrot.lane.b32.xlu0 %v2410_v49, %s2541_s15 }
 0x4b6   :  { %v2412_v61 = vpop.eup %2411 }
 0x4b7   :  { %369 = vrot.lane.b32.xlu1 %v2412_v61, %s2541_s15 }
 0x4ba   :  { %v2414_v62 = vpop.eup %2413 }
 0x4bb   :  { %371 = vrot.lane.b32.xlu0 %v2414_v62, %s2541_s15 }
 0x524   :  { %v368_v55 = vpop.permute.xlu0 %367 }
 0x525   :  { %v376_v63 = vmul.f32 %v368_v55, %v325_v35 }
 0x527   :  { %386 = vrot.lane.b32.xlu1 %v376_v63, %s2542_s16 }
 0x529   :  { %v370_v5 = vpop.permute.xlu1 %369 }
 0x52a   :  { %v377_v54 = vmul.f32 %v370_v5, %v326_v39 }
 0x52c   :  { %388 = vrot.lane.b32.xlu0 %v377_v54, %s2542_s16 }
 0x52d   :  { %v372_v6 = vpop.permute.xlu0 %371 }
 0x52e   :  { %v378_v7 = vmul.f32 %v372_v6, %v327_v42 }
 0x530   :  { %390 = vrot.lane.b32.xlu1 %v378_v7, %s2542_s16 }
 0x599   :  { %v387_v8 = vpop.permute.xlu1 %386 }
 0x59a   :  { %2193 = vmatmul.mubr.msk.f32.vlgmr.msra.gmra.mxu0 %vm38_vm4, %v387_v8 }
 0x59b   :  { %2195 = vmatprep.mubr.msk.f32.mxu0 %vm2540_vm0, %v2539_v0  ;;  %2219 = vmatpush3.msra.mxu0 %v2588_v1 }
 0x59c   :  { %2220 = vmatprep.subr.mxu0 %v2539_v0 }
 0x59d   :  { %2221 = vmatpush3.msra.mxu0 %v2593_v2 }
 0x59e   :  { %v389_v9 = vpop.permute.xlu0 %388  ;;  %2222 = vmatprep.subr.mxu0 %v2539_v0 }
 0x59f   :  { %2196 = vmatmul.mubr.msk.f32.gmra.mxu0 %vm38_vm4, %v389_v9 }
 0x5a0   :  { %2198 = vmatprep.mubr.msk.f32.mxu0 %vm2540_vm0, %v2539_v0  ;;  %2223 = vmatpush3.msra.mxu0 %v2602_v3 }
 0x5a1   :  { %2224 = vmatprep.subr.mxu0 %v2539_v0 }
 0x5a2   :  { %v391_v10 = vpop.permute.xlu1 %390  ;;  %2225 = vmatpush3.msra.mxu0 %v2611_v4 }
 0x5a3   :  { %2199 = vmatmul.mubr.msk.f32.gmra.mxu0 %vm38_vm4, %v391_v10  ;;  %2252 = vmatprep.subr.mxu0 %v2539_v0 }
 0x5a4   :  { %2226 = vmatprep.mubr.msk.f32.mxu0 %vm2540_vm0, %v2539_v0 }
 0x65a   :  { %v464_v12 = vpop.f32.mrf.mxu0 }
 0x65b   :  { %v465_v13 = vadd.f32 %v1970_v11, %v464_v12 }
 0x65c   :  { %v2194_v14 = vpop.f32.mrf.mxu0 }
 0x65d   :  { %v1976_v15 = vmul.f32 -1.442695, %v465_v13  ;;  %v1982_v13 = vld [vmem:[%s3207_s0 + $0x48] sm:$0xff] }
 0x65f   :  { %2415 = vpow2.f32 %v1976_v15  ;;  %v469_v17 = vpop.f32.mrf.mxu0 }
 0x660   :  { %v470_v18 = vadd.f32 %v1971_v16, %v469_v17 }
 0x661   :  { %v2197_v19 = vpop.f32.mrf.mxu0 }
 0x662   :  { %v1977_v21 = vmul.f32 -1.442695, %v470_v18  ;;  %v1983_v18 = vld [vmem:[%s3207_s0 + $0x50] sm:$0xff] }
 0x663   :  { %v474_v22 = vpop.f32.mrf.mxu0 }
 0x664   :  { %2417 = vpow2.f32 %v1977_v21  ;;  %v475_v23 = vadd.f32 %v1972_v20, %v474_v22  ;;  %v1984_v22 = vld [vmem:[%s3207_s0 + $0x58] sm:$0xff] }
 0x665   :  { %v2200_v24 = vpop.f32.mrf.mxu0 }
 0x666   :  { %v1978_v25 = vmul.f32 -1.442695, %v475_v23 }
 0x668   :  { %2419 = vpow2.f32 %v1978_v25 }
 0x66c   :  { %v2416_v26 = vpop.eup %2415 }
 0x66d   :  { %v487_v27 = vadd.f32 1.0, %v2416_v26 }
 0x66f   :  { %2421 = vrcp.f32 %v487_v27 }
 0x671   :  { %v2418_v28 = vpop.eup %2417 }
 0x672   :  { %v488_v29 = vadd.f32 1.0, %v2418_v28 }
 0x674   :  { %2423 = vrcp.f32 %v488_v29 }
 0x675   :  { %v2420_v30 = vpop.eup %2419 }
 0x676   :  { %v489_v32 = vadd.f32 1.0, %v2420_v30 }
 0x678   :  { %2425 = vrcp.f32 %v489_v32 }
 0x67c   :  { %v2422_v33 = vpop.eup %2421 }
 0x67d   :  { %v496_v34 = vmul.f32 2.0, %v2422_v33 }
 0x67f   :  { %v1979_v35 = vadd.f32 -1.0, %v496_v34 }
 0x681   :  { %v2424_v36 = vpop.eup %2423  ;;  %v502_v37 = vsel %vm2659_vm3, %v1979_v35, %v2422_v33 }
 0x682   :  { %511 = vrot.lane.b32.xlu0 %v502_v37, %s2541_s15  ;;  %v497_v38 = vmul.f32 2.0, %v2424_v36  ;;  %v505_v53 = vmul.f32 %v502_v37, %v2729_v52 }
 0x684   :  { %v1980_v39 = vadd.f32 -1.0, %v497_v38 }
 0x685   :  { %v2426_v40 = vpop.eup %2425 }
 0x686   :  { %v503_v41 = vsel %vm2659_vm3, %v1980_v39, %v2424_v36  ;;  %v498_v42 = vmul.f32 2.0, %v2426_v40 }
 0x687   :  { %513 = vrot.lane.b32.xlu1 %v503_v41, %s2541_s15  ;;  %v506_v59 = vmul.f32 %v503_v41, %v2733_v57 }
 0x688   :  { %v1981_v43 = vadd.f32 -1.0, %v498_v42 }
 0x68a   :  { %v504_v44 = vsel %vm2659_vm3, %v1981_v43, %v2426_v40 }
 0x68b   :  { %515 = vrot.lane.b32.xlu0 %v504_v44, %s2541_s15  ;;  %v507_v62 = vmul.f32 %v504_v44, %v2737_v60 }
 0x6f4   :  { %v512_v45 = vpop.permute.xlu0 %511 }
 0x6f5   :  { %v520_v46 = vmul.f32 %v512_v45, %v502_v37 }
 0x6f7   :  { %526 = vrot.lane.b32.xlu1 %v520_v46, %s2542_s16 }
 0x6f9   :  { %v514_v47 = vpop.permute.xlu1 %513 }
 0x6fa   :  { %v521_v48 = vmul.f32 %v514_v47, %v503_v41 }
 0x6fc   :  { %528 = vrot.lane.b32.xlu0 %v521_v48, %s2542_s16 }
 0x6fd   :  { %v516_v50 = vpop.permute.xlu0 %515 }
 0x6fe   :  { %v522_v51 = vmul.f32 %v516_v50, %v504_v44 }
 0x700   :  { %530 = vrot.lane.b32.xlu1 %v522_v51, %s2542_s16 }
 0x769   :  { %v527_v56 = vpop.permute.xlu1 %526 }
 0x76a   :  { %v2785_v58 = vadd.f32 %v527_v56, %v505_v53 }
 0x76c   :  { %2427 = vtanh.f32 %v2785_v58 }
 0x76e   :  { %v529_v49 = vpop.permute.xlu0 %528 }
 0x76f   :  { %v2789_v61 = vadd.f32 %v529_v49, %v506_v59 }
 0x771   :  { %2429 = vtanh.f32 %v2789_v61 }
 0x772   :  { %v531_v55 = vpop.permute.xlu1 %530 }
 0x773   :  { %v2793_v63 = vadd.f32 %v531_v55, %v507_v62 }
 0x775   :  { %2431 = vtanh.f32 %v2793_v63 }
 0x779   :  { %v2428_v52 = vpop.eup %2427 }
 0x77a   :  { %544 = vrot.lane.b32.xlu0 %v2428_v52, %s2541_s15 }
 0x77e   :  { %v2430_v5 = vpop.eup %2429 }
 0x77f   :  { %546 = vrot.lane.b32.xlu1 %v2430_v5, %s2541_s15 }
 0x782   :  { %v2432_v54 = vpop.eup %2431 }
 0x783   :  { %548 = vrot.lane.b32.xlu0 %v2432_v54, %s2541_s15 }
 0x7ec   :  { %v545_v57 = vpop.permute.xlu0 %544 }
 0x7ed   :  { %v553_v6 = vmul.f32 %v545_v57, %v502_v37 }
 0x7ef   :  { %563 = vrot.lane.b32.xlu1 %v553_v6, %s2542_s16 }
 0x7f1   :  { %v547_v7 = vpop.permute.xlu1 %546 }
 0x7f2   :  { %v554_v60 = vmul.f32 %v547_v7, %v503_v41 }
 0x7f4   :  { %565 = vrot.lane.b32.xlu0 %v554_v60, %s2542_s16 }
 0x7f5   :  { %v549_v8 = vpop.permute.xlu0 %548 }
 0x7f6   :  { %v555_v9 = vmul.f32 %v549_v8, %v504_v44 }
 0x7f8   :  { %567 = vrot.lane.b32.xlu1 %v555_v9, %s2542_s16 }
 0x861   :  { %v564_v10 = vpop.permute.xlu1 %563 }
 0x862   :  { %2210 = vmatmul.mubr.msk.f32.vlgmr.msra.gmra.mxu1 %vm38_vm4, %v564_v10 }
 0x863   :  { %2212 = vmatprep.mubr.msk.f32.mxu1 %vm2540_vm0, %v2539_v0  ;;  %2236 = vmatpush3.msra.mxu1 %v2588_v1 }
 0x864   :  { %2237 = vmatprep.subr.mxu1 %v2539_v0 }
 0x865   :  { %2238 = vmatpush3.msra.mxu1 %v2593_v2 }
 0x866   :  { %v566_v11 = vpop.permute.xlu0 %565  ;;  %2239 = vmatprep.subr.mxu1 %v2539_v0 }
 0x867   :  { %2213 = vmatmul.mubr.msk.f32.gmra.mxu1 %vm38_vm4, %v566_v11 }
 0x868   :  { %2215 = vmatprep.mubr.msk.f32.mxu1 %vm2540_vm0, %v2539_v0  ;;  %2240 = vmatpush3.msra.mxu1 %v2602_v3 }
 0x869   :  { %2241 = vmatprep.subr.mxu1 %v2539_v0 }
 0x86a   :  { %v568_v12 = vpop.permute.xlu1 %567  ;;  %2242 = vmatpush3.msra.mxu1 %v2611_v4 }
 0x86b   :  { %2216 = vmatmul.mubr.msk.f32.gmra.mxu1 %vm38_vm4, %v568_v12  ;;  %2269 = vmatprep.subr.mxu1 %v2539_v0 }
 0x86c   :  { %2243 = vmatprep.mubr.msk.f32.mxu1 %vm2540_vm0, %v2539_v0 }
 0x922   :  { %v641_v14 = vpop.f32.mrf.mxu1 }
 0x923   :  { %v642_v15 = vadd.f32 %v1982_v13, %v641_v14 }
 0x924   :  { %v2211_v16 = vpop.f32.mrf.mxu1 }
 0x925   :  { %v1988_v17 = vmul.f32 -1.442695, %v642_v15 }
 0x927   :  { %2433 = vpow2.f32 %v1988_v17  ;;  %v646_v19 = vpop.f32.mrf.mxu1  ;;  %v1995_v17 = vld [vmem:[%s3207_s0 + $0x68] sm:$0xff] }
 0x928   :  { %v647_v20 = vadd.f32 %v1983_v18, %v646_v19 }
 0x929   :  { %v2214_v21 = vpop.f32.mrf.mxu1 }
 0x92a   :  { %v1989_v23 = vmul.f32 -1.442695, %v647_v20  ;;  %v1996_v20 = vld [vmem:[%s3207_s0 + $0x70] sm:$0xff] }
 0x92b   :  { %v651_v24 = vpop.f32.mrf.mxu1 }
 0x92c   :  { %2435 = vpow2.f32 %v1989_v23  ;;  %v652_v25 = vadd.f32 %v1984_v22, %v651_v24 }
 0x92d   :  { %v2217_v26 = vpop.f32.mrf.mxu1 }
 0x92e   :  { %v1990_v27 = vmul.f32 -1.442695, %v652_v25 }
 0x930   :  { %2437 = vpow2.f32 %v1990_v27 }
 0x934   :  { %v2434_v28 = vpop.eup %2433 }
 0x935   :  { %v664_v29 = vadd.f32 1.0, %v2434_v28 }
 0x937   :  { %2439 = vrcp.f32 %v664_v29 }
 0x939   :  { %v2436_v30 = vpop.eup %2435 }
 0x93a   :  { %v665_v32 = vadd.f32 1.0, %v2436_v30 }
 0x93c   :  { %2441 = vrcp.f32 %v665_v32 }
 0x93d   :  { %v2438_v33 = vpop.eup %2437 }
 0x93e   :  { %v666_v34 = vadd.f32 1.0, %v2438_v33 }
 0x940   :  { %2443 = vrcp.f32 %v666_v34 }
 0x944   :  { %v2440_v35 = vpop.eup %2439 }
 0x945   :  { %v673_v36 = vmul.f32 2.0, %v2440_v35 }
 0x947   :  { %v1991_v37 = vadd.f32 -1.0, %v673_v36 }
 0x949   :  { %v2442_v38 = vpop.eup %2441  ;;  %v679_v39 = vsel %vm2659_vm3, %v1991_v37, %v2440_v35 }
 0x94a   :  { %688 = vrot.lane.b32.xlu0 %v679_v39, %s2541_s15  ;;  %v674_v40 = vmul.f32 2.0, %v2442_v38  ;;  %v682_v59 = vmul.f32 %v679_v39, %v2785_v58 }
 0x94c   :  { %v1992_v41 = vadd.f32 -1.0, %v674_v40 }
 0x94d   :  { %v2444_v42 = vpop.eup %2443 }
 0x94e   :  { %v680_v43 = vsel %vm2659_vm3, %v1992_v41, %v2442_v38  ;;  %v675_v44 = vmul.f32 2.0, %v2444_v42 }
 0x94f   :  { %690 = vrot.lane.b32.xlu1 %v680_v43, %s2541_s15  ;;  %v683_v55 = vmul.f32 %v680_v43, %v2789_v61 }
 0x950   :  { %v1993_v45 = vadd.f32 -1.0, %v675_v44 }
 0x952   :  { %v681_v46 = vsel %vm2659_vm3, %v1993_v45, %v2444_v42 }
 0x953   :  { %692 = vrot.lane.b32.xlu0 %v681_v46, %s2541_s15  ;;  %v684_v54 = vmul.f32 %v681_v46, %v2793_v63 }
 0x9bc   :  { %v689_v47 = vpop.permute.xlu0 %688 }
 0x9bd   :  { %v697_v48 = vmul.f32 %v689_v47, %v679_v39 }
 0x9bf   :  { %703 = vrot.lane.b32.xlu1 %v697_v48, %s2542_s16 }
 0x9c1   :  { %v691_v50 = vpop.permute.xlu1 %690 }
 0x9c2   :  { %v698_v51 = vmul.f32 %v691_v50, %v680_v43 }
 0x9c4   :  { %705 = vrot.lane.b32.xlu0 %v698_v51, %s2542_s16 }
 0x9c5   :  { %v693_v53 = vpop.permute.xlu0 %692 }
 0x9c6   :  { %v699_v56 = vmul.f32 %v693_v53, %v681_v46 }
 0x9c8   :  { %707 = vrot.lane.b32.xlu1 %v699_v56, %s2542_s16 }
 0xa31   :  { %v704_v49 = vpop.permute.xlu1 %703 }
 0xa32   :  { %v2841_v62 = vadd.f32 %v704_v49, %v682_v59 }
 0xa34   :  { %2445 = vtanh.f32 %v2841_v62 }
 0xa36   :  { %v706_v52 = vpop.permute.xlu0 %705 }
 0xa37   :  { %v2845_v5 = vadd.f32 %v706_v52, %v683_v55 }
 0xa39   :  { %2447 = vtanh.f32 %v2845_v5 }
 0xa3a   :  { %v708_v57 = vpop.permute.xlu1 %707 }
 0xa3b   :  { %v2849_v6 = vadd.f32 %v708_v57, %v684_v54 }
 0xa3d   :  { %2449 = vtanh.f32 %v2849_v6 }
 0xa41   :  { %v2446_v58 = vpop.eup %2445 }
 0xa42   :  { %721 = vrot.lane.b32.xlu0 %v2446_v58, %s2541_s15 }
 0xa46   :  { %v2448_v7 = vpop.eup %2447 }
 0xa47   :  { %723 = vrot.lane.b32.xlu1 %v2448_v7, %s2541_s15 }
 0xa4a   :  { %v2450_v60 = vpop.eup %2449 }
 0xa4b   :  { %725 = vrot.lane.b32.xlu0 %v2450_v60, %s2541_s15 }
 0xab4   :  { %v722_v61 = vpop.permute.xlu0 %721 }
 0xab5   :  { %v730_v8 = vmul.f32 %v722_v61, %v679_v39 }
 0xab7   :  { %740 = vrot.lane.b32.xlu1 %v730_v8, %s2542_s16 }
 0xab9   :  { %v724_v9 = vpop.permute.xlu1 %723 }
 0xaba   :  { %v731_v63 = vmul.f32 %v724_v9, %v680_v43 }
 0xabc   :  { %742 = vrot.lane.b32.xlu0 %v731_v63, %s2542_s16 }
 0xabd   :  { %v726_v10 = vpop.permute.xlu0 %725 }
 0xabe   :  { %v732_v11 = vmul.f32 %v726_v10, %v681_v46 }
 0xac0   :  { %744 = vrot.lane.b32.xlu1 %v732_v11, %s2542_s16  ;;  %v2535_v11 = vld [vmem:[%s3206_s1 + $0x18] sm:$0xff] }
 0xb29   :  { %v741_v12 = vpop.permute.xlu1 %740 }
 0xb2a   :  { %2227 = vmatmul.mubr.msk.f32.vlgmr.msra.gmra.mxu0 %vm38_vm4, %v741_v12  ;;  %v2536_v12 = vld [vmem:[%s3206_s1 + $0x10] sm:$0xff] }
 0xb2b   :  { %2229 = vmatprep.mubr.msk.f32.mxu0 %vm2540_vm0, %v2539_v0  ;;  %2253 = vmatpush3.msra.mxu0 %v2588_v1  ;;  %v1994_v1 = vld [vmem:[%s3207_s0 + $0x60] sm:$0xff] }
 0xb2c   :  { %2254 = vmatprep.subr.mxu0 %v2539_v0 }
 0xb2d   :  { %2255 = vmatpush3.msra.mxu0 %v2593_v2 }
 0xb2e   :  { %v743_v13 = vpop.permute.xlu0 %742  ;;  %2256 = vmatprep.subr.mxu0 %v2539_v0 }
 0xb2f   :  { %2230 = vmatmul.mubr.msk.f32.gmra.mxu0 %vm38_vm4, %v743_v13 }
 0xb30   :  { %2232 = vmatprep.mubr.msk.f32.mxu0 %vm2540_vm0, %v2539_v0  ;;  %2257 = vmatpush3.msra.mxu0 %v2602_v3 }
 0xb31   :  { %2258 = vmatprep.subr.mxu0 %v2539_v0 }
 0xb32   :  { %v745_v14 = vpop.permute.xlu1 %744  ;;  %2259 = vmatpush3.msra.mxu0 %v2611_v4 }
 0xb33   :  { %2233 = vmatmul.mubr.msk.f32.gmra.mxu0 %vm38_vm4, %v745_v14  ;;  %2286 = vmatprep.subr.mxu0 %v2539_v0  ;;  %v2537_v14 = vld [vmem:[%s3206_s1 + $0x8] sm:$0xff] }
 0xb34   :  { %2260 = vmatprep.mubr.msk.f32.mxu0 %vm2540_vm0, %v2539_v0 }
 0xbea   :  { %v818_v2 = vpop.f32.mrf.mxu0 }
 0xbeb   :  { %v819_v15 = vadd.f32 %v1994_v1, %v818_v2  ;;  %v2538_v2 = vld [vmem:[%s3206_s1] sm:$0xff] }
 0xbec   :  { %v2228_v16 = vpop.f32.mrf.mxu0 }
 0xbed   :  { %v2000_v3 = vmul.f32 -1.442695, %v819_v15  ;;  %v2006_v15 = vld [vmem:[%s3207_s0 + $0x78] sm:$0xff] }
 0xbef   :  { %2451 = vpow2.f32 %v2000_v3  ;;  %v823_v4 = vpop.f32.mrf.mxu0 }
 0xbf0   :  { %v824_v18 = vadd.f32 %v1995_v17, %v823_v4 }
 0xbf1   :  { %v2231_v19 = vpop.f32.mrf.mxu0 }
 0xbf2   :  { %v2001_v21 = vmul.f32 -1.442695, %v824_v18  ;;  %v2007_v18 = vld [vmem:[%s3207_s0 + $0x80] sm:$0xff] }
 0xbf3   :  { %v828_v22 = vpop.f32.mrf.mxu0 }
 0xbf4   :  { %2453 = vpow2.f32 %v2001_v21  ;;  %v829_v23 = vadd.f32 %v1996_v20, %v828_v22  ;;  %v2008_v22 = vld [vmem:[%s3207_s0 + $0x88] sm:$0xff] }
 0xbf5   :  { %v2234_v24 = vpop.f32.mrf.mxu0 }
 0xbf6   :  { %v2002_v25 = vmul.f32 -1.442695, %v829_v23 }
 0xbf8   :  { %2455 = vpow2.f32 %v2002_v25 }
 0xbfc   :  { %v2452_v26 = vpop.eup %2451 }
 0xbfd   :  { %v841_v27 = vadd.f32 1.0, %v2452_v26 }
 0xbff   :  { %2457 = vrcp.f32 %v841_v27 }
 0xc01   :  { %v2454_v28 = vpop.eup %2453 }
 0xc02   :  { %v842_v29 = vadd.f32 1.0, %v2454_v28 }
 0xc04   :  { %2459 = vrcp.f32 %v842_v29 }
 0xc05   :  { %v2456_v30 = vpop.eup %2455 }
 0xc06   :  { %v843_v32 = vadd.f32 1.0, %v2456_v30 }
 0xc08   :  { %2461 = vrcp.f32 %v843_v32 }
 0xc0c   :  { %v2458_v33 = vpop.eup %2457 }
 0xc0d   :  { %v850_v34 = vmul.f32 2.0, %v2458_v33 }
 0xc0f   :  { %v2003_v35 = vadd.f32 -1.0, %v850_v34 }
 0xc11   :  { %v2460_v36 = vpop.eup %2459  ;;  %v856_v37 = vsel %vm2659_vm3, %v2003_v35, %v2458_v33 }
 0xc12   :  { %865 = vrot.lane.b32.xlu0 %v856_v37, %s2541_s15  ;;  %v851_v38 = vmul.f32 2.0, %v2460_v36  ;;  %v859_v53 = vmul.f32 %v856_v37, %v2841_v62 }
 0xc14   :  { %v2004_v39 = vadd.f32 -1.0, %v851_v38 }
 0xc15   :  { %v2462_v40 = vpop.eup %2461 }
 0xc16   :  { %v857_v41 = vsel %vm2659_vm3, %v2004_v39, %v2460_v36  ;;  %v852_v42 = vmul.f32 2.0, %v2462_v40 }
 0xc17   :  { %867 = vrot.lane.b32.xlu1 %v857_v41, %s2541_s15  ;;  %v860_v49 = vmul.f32 %v857_v41, %v2845_v5 }
 0xc18   :  { %v2005_v43 = vadd.f32 -1.0, %v852_v42 }
 0xc1a   :  { %v858_v44 = vsel %vm2659_vm3, %v2005_v43, %v2462_v40 }
 0xc1b   :  { %869 = vrot.lane.b32.xlu0 %v858_v44, %s2541_s15  ;;  %v861_v54 = vmul.f32 %v858_v44, %v2849_v6 }
 0xc84   :  { %v866_v45 = vpop.permute.xlu0 %865 }
 0xc85   :  { %v874_v46 = vmul.f32 %v866_v45, %v856_v37 }
 0xc87   :  { %880 = vrot.lane.b32.xlu1 %v874_v46, %s2542_s16 }
 0xc89   :  { %v868_v47 = vpop.permute.xlu1 %867 }
 0xc8a   :  { %v875_v48 = vmul.f32 %v868_v47, %v857_v41 }
 0xc8c   :  { %882 = vrot.lane.b32.xlu0 %v875_v48, %s2542_s16 }
 0xc8d   :  { %v870_v50 = vpop.permute.xlu0 %869 }
 0xc8e   :  { %v876_v51 = vmul.f32 %v870_v50, %v858_v44 }
 0xc90   :  { %884 = vrot.lane.b32.xlu1 %v876_v51, %s2542_s16 }
 0xcf9   :  { %v881_v56 = vpop.permute.xlu1 %880 }
 0xcfa   :  { %v2897_v59 = vadd.f32 %v881_v56, %v859_v53 }
 0xcfc   :  { %2463 = vtanh.f32 %v2897_v59 }
 0xcfe   :  { %v883_v55 = vpop.permute.xlu0 %882 }
 0xcff   :  { %v2901_v52 = vadd.f32 %v883_v55, %v860_v49 }
 0xd01   :  { %2465 = vtanh.f32 %v2901_v52 }
 0xd02   :  { %v885_v57 = vpop.permute.xlu1 %884 }
 0xd03   :  { %v2905_v58 = vadd.f32 %v885_v57, %v861_v54 }
 0xd05   :  { %2467 = vtanh.f32 %v2905_v58 }
 0xd09   :  { %v2464_v62 = vpop.eup %2463 }
 0xd0a   :  { %898 = vrot.lane.b32.xlu0 %v2464_v62, %s2541_s15 }
 0xd0e   :  { %v2466_v7 = vpop.eup %2465 }
 0xd0f   :  { %900 = vrot.lane.b32.xlu1 %v2466_v7, %s2541_s15 }
 0xd12   :  { %v2468_v60 = vpop.eup %2467 }
 0xd13   :  { %902 = vrot.lane.b32.xlu0 %v2468_v60, %s2541_s15 }
 0xd7c   :  { %v899_v5 = vpop.permute.xlu0 %898 }
 0xd7d   :  { %v907_v61 = vmul.f32 %v899_v5, %v856_v37 }
 0xd7f   :  { %917 = vrot.lane.b32.xlu1 %v907_v61, %s2542_s16 }
 0xd81   :  { %v901_v8 = vpop.permute.xlu1 %900 }
 0xd82   :  { %v908_v6 = vmul.f32 %v901_v8, %v857_v41 }
 0xd84   :  { %919 = vrot.lane.b32.xlu0 %v908_v6, %s2542_s16 }
 0xd85   :  { %v903_v9 = vpop.permute.xlu0 %902 }
 0xd86   :  { %v909_v63 = vmul.f32 %v903_v9, %v858_v44 }
 0xd88   :  { %921 = vrot.lane.b32.xlu1 %v909_v63, %s2542_s16 }
 0xdf1   :  { %v918_v10 = vpop.permute.xlu1 %917 }
 0xdf2   :  { %2244 = vmatmul.mubr.msk.f32.vlgmr.msra.gmra.mxu1 %vm38_vm4, %v918_v10 }
 0xdf3   :  { %2246 = vmatprep.mubr.msk.f32.mxu1 %vm2540_vm0, %v2539_v0  ;;  %2270 = vmatpush3.msra.mxu1 %v2535_v11 }
 0xdf4   :  { %2271 = vmatprep.subr.mxu1 %v2539_v0 }
 0xdf5   :  { %2272 = vmatpush3.msra.mxu1 %v2536_v12 }
 0xdf6   :  { %v920_v13 = vpop.permute.xlu0 %919  ;;  %2273 = vmatprep.subr.mxu1 %v2539_v0 }
 0xdf7   :  { %2247 = vmatmul.mubr.msk.f32.gmra.mxu1 %vm38_vm4, %v920_v13 }
 0xdf8   :  { %2249 = vmatprep.mubr.msk.f32.mxu1 %vm2540_vm0, %v2539_v0  ;;  %2274 = vmatpush3.msra.mxu1 %v2537_v14 }
 0xdf9   :  { %2275 = vmatprep.subr.mxu1 %v2539_v0 }
 0xdfa   :  { %v922_v1 = vpop.permute.xlu1 %921  ;;  %2276 = vmatpush3.msra.mxu1 %v2538_v2 }
 0xdfb   :  { %2250 = vmatmul.mubr.msk.f32.gmra.mxu1 %vm38_vm4, %v922_v1  ;;  %2303 = vmatprep.subr.mxu1 %v2539_v0  ;;  %v2018_v1 = vld [vmem:[%s3207_s0 + $0x90] sm:$0xff] }
 0xdfc   :  { %2277 = vmatprep.mubr.msk.f32.mxu1 %vm2540_vm0, %v2539_v0 }
 0xeb2   :  { %v995_v16 = vpop.f32.mrf.mxu1 }
 0xeb3   :  { %v996_v3 = vadd.f32 %v2006_v15, %v995_v16 }
 0xeb4   :  { %v2245_v17 = vpop.f32.mrf.mxu1 }
 0xeb5   :  { %v2012_v4 = vmul.f32 -1.442695, %v996_v3  ;;  %v2019_v17 = vld [vmem:[%s3207_s0 + $0x98] sm:$0xff] }
 0xeb7   :  { %2469 = vpow2.f32 %v2012_v4  ;;  %v1000_v19 = vpop.f32.mrf.mxu1 }
 0xeb8   :  { %v1001_v20 = vadd.f32 %v2007_v18, %v1000_v19 }
 0xeb9   :  { %v2248_v21 = vpop.f32.mrf.mxu1 }
 0xeba   :  { %v2013_v23 = vmul.f32 -1.442695, %v1001_v20  ;;  %v2020_v20 = vld [vmem:[%s3207_s0 + $0xa0] sm:$0xff] }
 0xebb   :  { %v1005_v24 = vpop.f32.mrf.mxu1 }
 0xebc   :  { %2471 = vpow2.f32 %v2013_v23  ;;  %v1006_v25 = vadd.f32 %v2008_v22, %v1005_v24 }
 0xebd   :  { %v2251_v26 = vpop.f32.mrf.mxu1 }
 0xebe   :  { %v2014_v27 = vmul.f32 -1.442695, %v1006_v25 }
 0xec0   :  { %2473 = vpow2.f32 %v2014_v27 }
 0xec4   :  { %v2470_v28 = vpop.eup %2469 }
 0xec5   :  { %v1018_v29 = vadd.f32 1.0, %v2470_v28 }
 0xec7   :  { %2475 = vrcp.f32 %v1018_v29 }
 0xec9   :  { %v2472_v30 = vpop.eup %2471 }
 0xeca   :  { %v1019_v32 = vadd.f32 1.0, %v2472_v30 }
 0xecc   :  { %2477 = vrcp.f32 %v1019_v32 }
 0xecd   :  { %v2474_v33 = vpop.eup %2473 }
 0xece   :  { %v1020_v34 = vadd.f32 1.0, %v2474_v33 }
 0xed0   :  { %2479 = vrcp.f32 %v1020_v34 }
 0xed4   :  { %v2476_v35 = vpop.eup %2475 }
 0xed5   :  { %v1027_v36 = vmul.f32 2.0, %v2476_v35 }
 0xed7   :  { %v2015_v37 = vadd.f32 -1.0, %v1027_v36 }
 0xed9   :  { %v2478_v38 = vpop.eup %2477  ;;  %v1033_v39 = vsel %vm2659_vm3, %v2015_v37, %v2476_v35 }
 0xeda   :  { %1042 = vrot.lane.b32.xlu0 %v1033_v39, %s2541_s15  ;;  %v1028_v40 = vmul.f32 2.0, %v2478_v38  ;;  %v1036_v49 = vmul.f32 %v1033_v39, %v2897_v59 }
 0xedc   :  { %v2016_v41 = vadd.f32 -1.0, %v1028_v40 }
 0xedd   :  { %v2480_v42 = vpop.eup %2479 }
 0xede   :  { %v1034_v43 = vsel %vm2659_vm3, %v2016_v41, %v2478_v38  ;;  %v1029_v44 = vmul.f32 2.0, %v2480_v42 }
 0xedf   :  { %1044 = vrot.lane.b32.xlu1 %v1034_v43, %s2541_s15  ;;  %v1037_v57 = vmul.f32 %v1034_v43, %v2901_v52 }
 0xee0   :  { %v2017_v45 = vadd.f32 -1.0, %v1029_v44 }
 0xee2   :  { %v1035_v46 = vsel %vm2659_vm3, %v2017_v45, %v2480_v42 }
 0xee3   :  { %1046 = vrot.lane.b32.xlu0 %v1035_v46, %s2541_s15  ;;  %v1038_v60 = vmul.f32 %v1035_v46, %v2905_v58 }
 0xf4c   :  { %v1043_v47 = vpop.permute.xlu0 %1042 }
 0xf4d   :  { %v1051_v48 = vmul.f32 %v1043_v47, %v1033_v39 }
 0xf4f   :  { %1057 = vrot.lane.b32.xlu1 %v1051_v48, %s2542_s16 }
 0xf51   :  { %v1045_v50 = vpop.permute.xlu1 %1044 }
 0xf52   :  { %v1052_v51 = vmul.f32 %v1045_v50, %v1034_v43 }
 0xf54   :  { %1059 = vrot.lane.b32.xlu0 %v1052_v51, %s2542_s16 }
 0xf55   :  { %v1047_v53 = vpop.permute.xlu0 %1046 }
 0xf56   :  { %v1053_v56 = vmul.f32 %v1047_v53, %v1035_v46 }
 0xf58   :  { %1061 = vrot.lane.b32.xlu1 %v1053_v56, %s2542_s16 }
 0xfc1   :  { %v1058_v55 = vpop.permute.xlu1 %1057 }
 0xfc2   :  { %v2961_v54 = vadd.f32 %v1058_v55, %v1036_v49 }
 0xfc4   :  { %2481 = vtanh.f32 %v2961_v54 }
 0xfc6   :  { %v1060_v62 = vpop.permute.xlu0 %1059 }
 0xfc7   :  { %v2965_v7 = vadd.f32 %v1060_v62, %v1037_v57 }
 0xfc9   :  { %2483 = vtanh.f32 %v2965_v7 }
 0xfca   :  { %v1062_v5 = vpop.permute.xlu1 %1061 }
 0xfcb   :  { %v2969_v61 = vadd.f32 %v1062_v5, %v1038_v60 }
 0xfcd   :  { %2485 = vtanh.f32 %v2969_v61 }
 0xfd1   :  { %v2482_v59 = vpop.eup %2481 }
 0xfd2   :  { %1075 = vrot.lane.b32.xlu0 %v2482_v59, %s2541_s15 }
 0xfd6   :  { %v2484_v8 = vpop.eup %2483 }
 0xfd7   :  { %1077 = vrot.lane.b32.xlu1 %v2484_v8, %s2541_s15 }
 0xfda   :  { %v2486_v6 = vpop.eup %2485 }
 0xfdb   :  { %1079 = vrot.lane.b32.xlu0 %v2486_v6, %s2541_s15 }
0x1044   :  { %v1076_v52 = vpop.permute.xlu0 %1075 }
0x1045   :  { %v1084_v9 = vmul.f32 %v1076_v52, %v1033_v39 }
0x1047   :  { %1094 = vrot.lane.b32.xlu1 %v1084_v9, %s2542_s16 }
0x1049   :  { %v1078_v63 = vpop.permute.xlu1 %1077 }
0x104a   :  { %v1085_v58 = vmul.f32 %v1078_v63, %v1034_v43 }
0x104c   :  { %1096 = vrot.lane.b32.xlu0 %v1085_v58, %s2542_s16 }
0x104d   :  { %v1080_v10 = vpop.permute.xlu0 %1079 }
0x104e   :  { %v1086_v11 = vmul.f32 %v1080_v10, %v1035_v46 }
0x1050   :  { %1098 = vrot.lane.b32.xlu1 %v1086_v11, %s2542_s16 }
0x10b9   :  { %v1095_v12 = vpop.permute.xlu1 %1094 }
0x10ba   :  { %2261 = vmatmul.mubr.msk.f32.vlgmr.msra.gmra.mxu0 %vm38_vm4, %v1095_v12 }
0x10bb   :  { %2263 = vmatprep.mubr.msk.f32.mxu0 %vm2540_vm0, %v2539_v0 }
0x10be   :  { %v1097_v13 = vpop.permute.xlu0 %1096 }
0x10bf   :  { %2264 = vmatmul.mubr.msk.f32.gmra.mxu0 %vm38_vm4, %v1097_v13  ;;  %v2030_v13 = vld [vmem:[%s3207_s0 + $0xa8] sm:$0xff] }
0x10c0   :  { %2266 = vmatprep.mubr.msk.f32.mxu0 %vm2540_vm0, %v2539_v0 }
0x10c2   :  { %v1099_v14 = vpop.permute.xlu1 %1098 }
0x10c3   :  { %2267 = vmatmul.mubr.msk.f32.gmra.mxu0 %vm38_vm4, %v1099_v14 }
0x10c4   :  { %2294 = vmatprep.mubr.msk.f32.mxu0 %vm2540_vm0, %v2539_v0 }
0x117a   :  { %v1172_v2 = vpop.f32.mrf.mxu0 }
0x117b   :  { %v1173_v15 = vadd.f32 %v2018_v1, %v1172_v2 }
0x117c   :  { %v2262_v16 = vpop.f32.mrf.mxu0 }
0x117d   :  { %v2024_v3 = vmul.f32 -1.442695, %v1173_v15  ;;  %v2031_v16 = vld [vmem:[%s3207_s0 + $0xb0] sm:$0xff] }
0x117f   :  { %2487 = vpow2.f32 %v2024_v3  ;;  %v1177_v4 = vpop.f32.mrf.mxu0 }
0x1180   :  { %v1178_v18 = vadd.f32 %v2019_v17, %v1177_v4 }
0x1181   :  { %v2265_v19 = vpop.f32.mrf.mxu0 }
0x1182   :  { %v2025_v21 = vmul.f32 -1.442695, %v1178_v18  ;;  %v2032_v18 = vld [vmem:[%s3207_s0 + $0xb8] sm:$0xff] }
0x1183   :  { %v1182_v22 = vpop.f32.mrf.mxu0 }
0x1184   :  { %2489 = vpow2.f32 %v2025_v21  ;;  %v1183_v23 = vadd.f32 %v2020_v20, %v1182_v22 }
0x1185   :  { %v2268_v24 = vpop.f32.mrf.mxu0 }
0x1186   :  { %v2026_v25 = vmul.f32 -1.442695, %v1183_v23 }
0x1188   :  { %2491 = vpow2.f32 %v2026_v25 }
0x118c   :  { %v2488_v26 = vpop.eup %2487 }
0x118d   :  { %v1195_v27 = vadd.f32 1.0, %v2488_v26 }
0x118f   :  { %2493 = vrcp.f32 %v1195_v27 }
0x1191   :  { %v2490_v28 = vpop.eup %2489 }
0x1192   :  { %v1196_v29 = vadd.f32 1.0, %v2490_v28 }
0x1194   :  { %2495 = vrcp.f32 %v1196_v29 }
0x1195   :  { %v2492_v30 = vpop.eup %2491 }
0x1196   :  { %v1197_v32 = vadd.f32 1.0, %v2492_v30 }
0x1198   :  { %2497 = vrcp.f32 %v1197_v32 }
0x119c   :  { %v2494_v33 = vpop.eup %2493 }
0x119d   :  { %v1204_v34 = vmul.f32 2.0, %v2494_v33 }
0x119f   :  { %v2027_v35 = vadd.f32 -1.0, %v1204_v34 }
0x11a1   :  { %v2496_v36 = vpop.eup %2495  ;;  %v1210_v37 = vsel %vm2659_vm3, %v2027_v35, %v2494_v33 }
0x11a2   :  { %1219 = vrot.lane.b32.xlu0 %v1210_v37, %s2541_s15  ;;  %v1205_v38 = vmul.f32 2.0, %v2496_v36  ;;  %v1213_v53 = vmul.f32 %v1210_v37, %v2961_v54 }
0x11a4   :  { %v2028_v39 = vadd.f32 -1.0, %v1205_v38 }
0x11a5   :  { %v2498_v40 = vpop.eup %2497 }
0x11a6   :  { %v1211_v41 = vsel %vm2659_vm3, %v2028_v39, %v2496_v36  ;;  %v1206_v42 = vmul.f32 2.0, %v2498_v40 }
0x11a7   :  { %1221 = vrot.lane.b32.xlu1 %v1211_v41, %s2541_s15  ;;  %v1214_v55 = vmul.f32 %v1211_v41, %v2965_v7 }
0x11a8   :  { %v2029_v43 = vadd.f32 -1.0, %v1206_v42 }
0x11aa   :  { %v1212_v44 = vsel %vm2659_vm3, %v2029_v43, %v2498_v40 }
0x11ab   :  { %1223 = vrot.lane.b32.xlu0 %v1212_v44, %s2541_s15  ;;  %v1215_v60 = vmul.f32 %v1212_v44, %v2969_v61 }
0x1214   :  { %v1220_v45 = vpop.permute.xlu0 %1219 }
0x1215   :  { %v1228_v46 = vmul.f32 %v1220_v45, %v1210_v37 }
0x1217   :  { %1234 = vrot.lane.b32.xlu1 %v1228_v46, %s2542_s16 }
0x1219   :  { %v1222_v47 = vpop.permute.xlu1 %1221 }
0x121a   :  { %v1229_v48 = vmul.f32 %v1222_v47, %v1211_v41 }
0x121c   :  { %1236 = vrot.lane.b32.xlu0 %v1229_v48, %s2542_s16 }
0x121d   :  { %v1224_v50 = vpop.permute.xlu0 %1223 }
0x121e   :  { %v1230_v51 = vmul.f32 %v1224_v50, %v1212_v44 }
0x1220   :  { %1238 = vrot.lane.b32.xlu1 %v1230_v51, %s2542_s16 }
0x1289   :  { %v1235_v56 = vpop.permute.xlu1 %1234 }
0x128a   :  { %v3009_v49 = vadd.f32 %v1235_v56, %v1213_v53 }
0x128c   :  { %2499 = vtanh.f32 %v3009_v49 }
0x128e   :  { %v1237_v57 = vpop.permute.xlu0 %1236 }
0x128f   :  { %v3013_v62 = vadd.f32 %v1237_v57, %v1214_v55 }
0x1291   :  { %2501 = vtanh.f32 %v3013_v62 }
0x1292   :  { %v1239_v5 = vpop.permute.xlu1 %1238 }
0x1293   :  { %v3017_v59 = vadd.f32 %v1239_v5, %v1215_v60 }
0x1295   :  { %2503 = vtanh.f32 %v3017_v59 }
0x1299   :  { %v2500_v54 = vpop.eup %2499 }
0x129a   :  { %1252 = vrot.lane.b32.xlu0 %v2500_v54, %s2541_s15 }
0x129e   :  { %v2502_v8 = vpop.eup %2501 }
0x129f   :  { %1254 = vrot.lane.b32.xlu1 %v2502_v8, %s2541_s15  ;;  %v1444_v8 = vld [vmem:[%s3208_s2 + $0x18] sm:$0xff] }
0x12a0   :  { %2287 = vmatpush3.msra.mxu0 %v1444_v8 }
0x12a1   :  { %2288 = vmatprep.subr.mxu0 %v2539_v0 }
0x12a2   :  { %v2504_v6 = vpop.eup %2503 }
0x12a3   :  { %1256 = vrot.lane.b32.xlu0 %v2504_v6, %s2541_s15 }
0x130c   :  { %v1253_v7 = vpop.permute.xlu0 %1252 }
0x130d   :  { %v1261_v52 = vmul.f32 %v1253_v7, %v1210_v37 }
0x130f   :  { %1271 = vrot.lane.b32.xlu1 %v1261_v52, %s2542_s16 }
0x1311   :  { %v1255_v9 = vpop.permute.xlu1 %1254 }
0x1312   :  { %v1262_v61 = vmul.f32 %v1255_v9, %v1211_v41 }
0x1314   :  { %1273 = vrot.lane.b32.xlu0 %v1262_v61, %s2542_s16 }
0x1315   :  { %v1257_v63 = vpop.permute.xlu0 %1256 }
0x1316   :  { %v1263_v58 = vmul.f32 %v1257_v63, %v1212_v44 }
0x1318   :  { %1275 = vrot.lane.b32.xlu1 %v1263_v58, %s2542_s16 }
0x1381   :  { %v1272_v10 = vpop.permute.xlu1 %1271 }
0x1382   :  { %2278 = vmatmul.mubr.msk.f32.vlgmr.msra.gmra.mxu1 %vm38_vm4, %v1272_v10 }
0x1383   :  { %2280 = vmatprep.mubr.msk.f32.mxu1 %vm2540_vm0, %v2539_v0 }
0x1386   :  { %v1274_v11 = vpop.permute.xlu0 %1273 }
0x1387   :  { %2281 = vmatmul.mubr.msk.f32.gmra.mxu1 %vm38_vm4, %v1274_v11 }
0x1388   :  { %2283 = vmatprep.mubr.msk.f32.mxu1 %vm2540_vm0, %v2539_v0 }
0x138a   :  { %v1276_v12 = vpop.permute.xlu1 %1275 }
0x138b   :  { %2284 = vmatmul.mubr.msk.f32.gmra.mxu1 %vm38_vm4, %v1276_v12 }
0x138c   :  { %2309 = vmatprep.mubr.msk.f32.mxu1 %vm2540_vm0, %v2539_v0 }
0x1442   :  { %v1349_v14 = vpop.f32.mrf.mxu1 }
0x1443   :  { %v1350_v1 = vadd.f32 %v2030_v13, %v1349_v14 }
0x1444   :  { %v2279_v2 = vpop.f32.mrf.mxu1 }
0x1445   :  { %v2036_v15 = vmul.f32 -1.442695, %v1350_v1 }
0x1447   :  { %2505 = vpow2.f32 %v2036_v15  ;;  %v1354_v3 = vpop.f32.mrf.mxu1 }
0x1448   :  { %v1355_v17 = vadd.f32 %v2031_v16, %v1354_v3 }
0x1449   :  { %v2282_v4 = vpop.f32.mrf.mxu1 }
0x144a   :  { %v2037_v19 = vmul.f32 -1.442695, %v1355_v17  ;;  %v1540_v17 = vld [vmem:[%s3209_s6] sm:$0xff] }
0x144b   :  { %v1359_v20 = vpop.f32.mrf.mxu1 }
0x144c   :  { %2507 = vpow2.f32 %v2037_v19  ;;  %v1360_v21 = vadd.f32 %v2032_v18, %v1359_v20 }
0x144d   :  { %v2285_v22 = vpop.f32.mrf.mxu1 }
0x144e   :  { %v2038_v23 = vmul.f32 -1.442695, %v1360_v21  ;;  %v1541_v21 = vld [vmem:[%s3209_s6 + $0x8] sm:$0xff] }
0x1450   :  { %2509 = vpow2.f32 %v2038_v23 }
0x1454   :  { %v2506_v24 = vpop.eup %2505 }
0x1455   :  { %v1372_v25 = vadd.f32 1.0, %v2506_v24 }
0x1457   :  { %2511 = vrcp.f32 %v1372_v25  ;;  %v1542_v25 = vld [vmem:[%s3209_s6 + $0x10] sm:$0xff] }
0x1459   :  { %v2508_v26 = vpop.eup %2507 }
0x145a   :  { %v1373_v27 = vadd.f32 1.0, %v2508_v26 }
0x145c   :  { %2513 = vrcp.f32 %v1373_v27 }
0x145d   :  { %v2510_v28 = vpop.eup %2509 }
0x145e   :  { %v1374_v29 = vadd.f32 1.0, %v2510_v28 }
0x1460   :  { %2515 = vrcp.f32 %v1374_v29 }
0x1464   :  { %v2512_v30 = vpop.eup %2511 }
0x1465   :  { %v1381_v32 = vmul.f32 2.0, %v2512_v30 }
0x1467   :  { %v2039_v33 = vadd.f32 -1.0, %v1381_v32 }
0x1469   :  { %v2514_v34 = vpop.eup %2513  ;;  %v1387_v35 = vsel %vm2659_vm3, %v2039_v33, %v2512_v30 }
0x146a   :  { %1396 = vrot.lane.b32.xlu0 %v1387_v35, %s2541_s15  ;;  %v1382_v36 = vmul.f32 2.0, %v2514_v34  ;;  %v1390_v50 = vmul.f32 %v1387_v35, %v3009_v49  ;;  %v1443_v49 = vld [vmem:[%s3208_s2 + $0x10] sm:$0xff] }
0x146b   :  { %2289 = vmatpush3.msra.mxu0 %v1443_v49  ;;  %v1759_v49 = vld [vmem:[%s3211_s3 + $0x8] sm:$0xff] }
0x146c   :  { %v2040_v37 = vadd.f32 -1.0, %v1382_v36  ;;  %2290 = vmatprep.subr.mxu0 %v2539_v0 }
0x146d   :  { %v2516_v38 = vpop.eup %2515 }
0x146e   :  { %v1388_v39 = vsel %vm2659_vm3, %v2040_v37, %v2514_v34  ;;  %v1383_v40 = vmul.f32 2.0, %v2516_v38 }
0x146f   :  { %1398 = vrot.lane.b32.xlu1 %v1388_v39, %s2541_s15  ;;  %v1391_v31 = vmul.f32 %v1388_v39, %v3013_v62  ;;  %v1442_v62 = vld [vmem:[%s3208_s2 + $0x8] sm:$0xff] }
0x1470   :  { %v2041_v41 = vadd.f32 -1.0, %v1383_v40  ;;  %2291 = vmatpush3.msra.mxu0 %v1442_v62  ;;  %v1758_v62 = vld [vmem:[%s3211_s3] sm:$0xff] }
0x1471   :  { %2292 = vmatprep.subr.mxu0 %v2539_v0 }
0x1472   :  { %v1389_v42 = vsel %vm2659_vm3, %v2041_v41, %v2516_v38 }
0x1473   :  { %1400 = vrot.lane.b32.xlu0 %v1389_v42, %s2541_s15  ;;  %v1392_v57 = vmul.f32 %v1389_v42, %v3017_v59  ;;  %v1441_v59 = vld [vmem:[%s3208_s2] sm:$0xff] }
0x1474   :  { %2293 = vmatpush3.msra.mxu0 %v1441_v59 }
0x1475   :  { %2318 = vmatprep.subr.mxu0 %v2539_v0 }
0x14dc   :  { %v1397_v43 = vpop.permute.xlu0 %1396 }
0x14dd   :  { %v1405_v44 = vmul.f32 %v1397_v43, %v1387_v35 }
0x14df   :  { %1411 = vrot.lane.b32.xlu1 %v1405_v44, %s2542_s16 }
0x14e1   :  { %v1399_v45 = vpop.permute.xlu1 %1398 }
0x14e2   :  { %v1406_v46 = vmul.f32 %v1399_v45, %v1388_v39 }
0x14e4   :  { %1413 = vrot.lane.b32.xlu0 %v1406_v46, %s2542_s16 }
0x14e5   :  { %v1401_v47 = vpop.permute.xlu0 %1400 }
0x14e6   :  { %v1407_v48 = vmul.f32 %v1401_v47, %v1389_v42  ;;  %v1765_v47 = vld [vmem:[%s3210_s4 + $0x18] sm:$0xff] }
0x14e8   :  { %1415 = vrot.lane.b32.xlu1 %v1407_v48, %s2542_s16  ;;  %v1764_v48 = vld [vmem:[%s3210_s4 + $0x10] sm:$0xff] }
0x1551   :  { %v1412_v51 = vpop.permute.xlu1 %1411 }
0x1552   :  { %v1420_v53 = vadd.f32 %v1412_v51, %v1390_v50  ;;  %v1763_v50 = vld [vmem:[%s3210_s4 + $0x8] sm:$0xff]  ;;  %v1762_v51 = vld [vmem:[%s3210_s4] sm:$0xff] }
0x1554   :  { %2517 = vtanh.f32 %v1420_v53 }
0x1556   :  { %v1414_v56 = vpop.permute.xlu0 %1413 }
0x1557   :  { %v1421_v55 = vadd.f32 %v1414_v56, %v1391_v31 }
0x1559   :  { %2519 = vtanh.f32 %v1421_v55 }
0x155a   :  { %v1416_v60 = vpop.permute.xlu1 %1415 }
0x155b   :  { %v1422_v5 = vadd.f32 %v1416_v60, %v1392_v57  ;;  %v1761_v60 = vld [vmem:[%s3211_s3 + $0x18] sm:$0xff] }
0x155d   :  { %2521 = vtanh.f32 %v1422_v5  ;;  %v1760_v5 = vld [vmem:[%s3211_s3 + $0x10] sm:$0xff] }
0x1561   :  { %v2518_v54 = vpop.eup %2517 }
0x1562   :  { %1429 = vrot.lane.b32.xlu0 %v2518_v54, %s2541_s15 }
0x1566   :  { %v2520_v6 = vpop.eup %2519 }
0x1567   :  { %1431 = vrot.lane.b32.xlu1 %v2520_v6, %s2541_s15 }
0x156a   :  { %v2522_v7 = vpop.eup %2521 }
0x156b   :  { %1433 = vrot.lane.b32.xlu0 %v2522_v7, %s2541_s15 }
0x15d4   :  { %v1430_v52 = vpop.permute.xlu0 %1429 }
0x15d5   :  { %v1438_v9 = vmul.f32 %v1430_v52, %v1387_v35 }
0x15d7   :  { %1448 = vrot.lane.b32.xlu1 %v1438_v9, %s2542_s16 }
0x15d9   :  { %v1432_v61 = vpop.permute.xlu1 %1431 }
0x15da   :  { %v1439_v63 = vmul.f32 %v1432_v61, %v1388_v39 }
0x15dc   :  { %1450 = vrot.lane.b32.xlu0 %v1439_v63, %s2542_s16 }
0x15dd   :  { %v1434_v58 = vpop.permute.xlu0 %1433 }
0x15de   :  { %v1440_v10 = vmul.f32 %v1434_v58, %v1389_v42 }
0x15e0   :  { %1452 = vrot.lane.b32.xlu1 %v1440_v10, %s2542_s16 }
0x1649   :  { %v3081_v11 = vpop.permute.xlu1 %1448 }
0x164a   :  { %2295 = vmatmul.mubr.msk.f32.vlgmr.msra.gmra.mxu0 %vm38_vm4, %v3081_v11 }
0x164b   :  { %2297 = vmatprep.mubr.msk.f32.mxu0 %vm2540_vm0, %v2539_v0 }
0x164e   :  { %v3087_v12 = vpop.permute.xlu0 %1450 }
0x164f   :  { %2298 = vmatmul.mubr.msk.f32.gmra.mxu0 %vm38_vm4, %v3087_v12 }
0x1650   :  { %2300 = vmatprep.mubr.msk.f32.mxu0 %vm2540_vm0, %v2539_v0 }
0x1652   :  { %v3093_v13 = vpop.permute.xlu1 %1452 }
0x1653   :  { %2301 = vmatmul.mubr.msk.f32.gmra.mxu0 %vm38_vm4, %v3093_v13  ;;  %2304 = vmatpush3.xpose.msk.msra.mxu1 %vm38_vm4, %v3093_v13 }
0x1654   :  { %2319 = vmatpush3.msra.mxu0 %v3093_v13  ;;  %2305 = vmatprep.subr.mxu1 %v2539_v0 }
0x1655   :  { %2320 = vmatprep.subr.mxu0 %v2539_v0  ;;  %2324 = vmatprep.mubr.msk.f32.mxu0 %vm2540_vm0, %v2539_v0 }
0x1656   :  { %2321 = vmatpush3.msra.mxu0 %v3087_v12 }
0x1657   :  { %2322 = vmatprep.subr.mxu0 %v2539_v0  ;;  %2306 = vmatpush3.xpose.msk.msra.mxu1 %vm38_vm4, %v3087_v12 }
0x1658   :  { %2323 = vmatpush3.msra.mxu0 %v3081_v11  ;;  %2307 = vmatprep.subr.mxu1 %v2539_v0 }
0x1659   :  { %2350 = vmatprep.subr.mxu0 %v2539_v0 }
0x165b   :  { %2308 = vmatpush3.xpose.msk.msra.mxu1 %vm38_vm4, %v3081_v11 }
0x165c   :  { %2333 = vmatprep.subr.mxu1 %v2539_v0 }
0x170a   :  { %v1526_v14 = vpop.f32.mrf.mxu0 }
0x170b   :  { %2310 = vmatmul.mubr.msk.f32.vlgmr.msra.gmra.mxu1 %vm38_vm4, %v1526_v14 }
0x170c   :  { %v2296_v1 = vpop.f32.mrf.mxu0  ;;  %2312 = vmatprep.mubr.msk.f32.mxu1 %vm2540_vm0, %v2539_v0  ;;  %2334 = vmatpush3.msra.mxu1 %v1765_v47 }
0x170d   :  { %2335 = vmatprep.subr.mxu1 %v2539_v0 }
0x170e   :  { %2336 = vmatpush3.msra.mxu1 %v1764_v48 }
0x170f   :  { %v1531_v2 = vpop.f32.mrf.mxu0  ;;  %2337 = vmatprep.subr.mxu1 %v2539_v0 }
0x1710   :  { %2313 = vmatmul.mubr.msk.f32.gmra.mxu1 %vm38_vm4, %v1531_v2 }
0x1711   :  { %v2299_v15 = vpop.f32.mrf.mxu0  ;;  %2315 = vmatprep.mubr.msk.f32.mxu1 %vm2540_vm0, %v2539_v0  ;;  %2338 = vmatpush3.msra.mxu1 %v1763_v50 }
0x1712   :  { %2339 = vmatprep.subr.mxu1 %v2539_v0  ;;  %v2060_v15 = vld [vmem:[%s3212_s5] ss:$0 sm:$0xff] }
0x1713   :  { %v1536_v16 = vpop.f32.mrf.mxu0  ;;  %2340 = vmatpush3.msra.mxu1 %v1762_v51 }
0x1714   :  { %2316 = vmatmul.mubr.msk.f32.gmra.mxu1 %vm38_vm4, %v1536_v16 }
0x1715   :  { %v2302_v3 = vpop.f32.mrf.mxu0  ;;  %2341 = vmatprep.mubr.msk.f32.mxu1 %vm2540_vm0, %v2539_v0 }
0x17cb   :  { %v1618_v4 = vpop.f32.mrf.mxu1 }
0x17cc   :  { %v1619_v18 = vadd.f32 %v1618_v4, %v1540_v17 }
0x17cd   :  { %v2311_v19 = vpop.f32.mrf.mxu1 }
0x17ce   :  { %v1633_v20 = vsel %vm1632_vm5, %v1619_v18, -inf }
0x17cf   :  { %1634 = vmax.xlane.f32.xlu0 %v1633_v20 }
0x17d0   :  { %v1623_v22 = vpop.f32.mrf.mxu1 }
0x17d1   :  { %v1624_v23 = vadd.f32 %v1623_v22, %v1541_v21 }
0x17d2   :  { %v2314_v24 = vpop.f32.mrf.mxu1 }
0x17d3   :  { %v1636_v26 = vsel %vm1632_vm5, %v1624_v23, -inf }
0x17d4   :  { %1637 = vmax.xlane.f32.xlu1 %v1636_v26  ;;  %v1628_v27 = vpop.f32.mrf.mxu1 }
0x17d5   :  { %v1629_v28 = vadd.f32 %v1628_v27, %v1542_v25 }
0x17d6   :  { %v2317_v29 = vpop.f32.mrf.mxu1 }
0x17d7   :  { %v1639_v30 = vsel %vm1632_vm5, %v1629_v28, -inf }
0x17d8   :  { %1640 = vmax.xlane.f32.xlu0 %v1639_v30 }
0x1858   :  { %v1635_v32 = vpop.xlane.xlu0 %1634 }
0x1859   :  { %v1642_v33 = vsub.f32 %v1619_v18, %v1635_v32 }
0x185b   :  { %v1645_v34 = vmul.f32 1.442695, %v1642_v33 }
0x185d   :  { %2523 = vpow2.f32 %v1645_v34  ;;  %v1638_v35 = vpop.xlane.xlu1 %1637 }
0x185e   :  { %v1643_v36 = vsub.f32 %v1624_v23, %v1638_v35 }
0x1860   :  { %v1647_v37 = vmul.f32 1.442695, %v1643_v36 }
0x1861   :  { %v1641_v38 = vpop.xlane.xlu0 %1640 }
0x1862   :  { %2525 = vpow2.f32 %v1647_v37  ;;  %v1644_v39 = vsub.f32 %v1629_v28, %v1641_v38 }
0x1864   :  { %v1649_v40 = vmul.f32 1.442695, %v1644_v39 }
0x1866   :  { %2527 = vpow2.f32 %v1649_v40 }
0x186a   :  { %v2524_v41 = vpop.eup %2523 }
0x186b   :  { %v1651_v42 = vsel %vm1632_vm5, %v2524_v41, 0.0 }
0x186c   :  { %1652 = vadd.xlane.f32.xlu0 %v1651_v42 }
0x186f   :  { %v2526_v43 = vpop.eup %2525 }
0x1870   :  { %v1654_v44 = vsel %vm1632_vm5, %v2526_v43, 0.0 }
0x1871   :  { %1655 = vadd.xlane.f32.xlu1 %v1654_v44 }
0x1873   :  { %v2528_v45 = vpop.eup %2527 }
0x1874   :  { %v1657_v46 = vsel %vm1632_vm5, %v2528_v45, 0.0 }
0x1875   :  { %1658 = vadd.xlane.f32.xlu0 %v1657_v46 }
0x18f5   :  { %v1653_v53 = vpop.xlane.xlu0 %1652 }
0x18f6   :  { %2529 = vrcp.f32 %v1653_v53 }
0x18fa   :  { %v1656_v31 = vpop.xlane.xlu1 %1655 }
0x18fb   :  { %2531 = vrcp.f32 %v1656_v31 }
0x18fe   :  { %v1659_v56 = vpop.xlane.xlu0 %1658 }
0x18ff   :  { %2533 = vrcp.f32 %v1659_v56 }
0x1903   :  { %v2530_v55 = vpop.eup %2529 }
0x1904   :  { %v1663_v57 = vmul.f32 %v2530_v55, %v2524_v41 }
0x1906   :  { %2325 = vmatmul.mubr.msk.f32.vlgmr.msra.gmra.mxu0 %vm1632_vm5, %v1663_v57 }
0x1907   :  { %2327 = vmatprep.mubr.msk.f32.mxu0 %vm2540_vm0, %v2539_v0  ;;  %2351 = vmatpush3.msra.mxu0 %v1761_v60 }
0x1908   :  { %v2532_v54 = vpop.eup %2531  ;;  %2352 = vmatprep.subr.mxu0 %v2539_v0 }
0x1909   :  { %v1664_v8 = vmul.f32 %v2532_v54, %v2526_v43  ;;  %2353 = vmatpush3.msra.mxu0 %v1760_v5 }
0x190a   :  { %2354 = vmatprep.subr.mxu0 %v2539_v0 }
0x190b   :  { %2328 = vmatmul.mubr.msk.f32.gmra.mxu0 %vm1632_vm5, %v1664_v8 }
0x190c   :  { %v2534_v59 = vpop.eup %2533  ;;  %2330 = vmatprep.mubr.msk.f32.mxu0 %vm2540_vm0, %v2539_v0  ;;  %2355 = vmatpush3.msra.mxu0 %v1759_v49 }
0x190d   :  { %v1665_v6 = vmul.f32 %v2534_v59, %v2528_v45  ;;  %2356 = vmatprep.subr.mxu0 %v2539_v0 }
0x190e   :  { %2357 = vmatpush3.msra.mxu0 %v1758_v62 }
0x190f   :  { %2331 = vmatmul.mubr.msk.f32.gmra.mxu0 %vm1632_vm5, %v1665_v6 }
0x1910   :  { %2358 = vmatprep.mubr.msk.f32.mxu0 %vm2540_vm0, %v2539_v0 }
0x1913   :  { %2359 = vmatmul.mubr.msk.f32.vlgmr.msra.gmra.mxu0 %vm38_vm4, %v3081_v11 }
0x1914   :  { %2361 = vmatprep.mubr.msk.f32.mxu0 %vm2540_vm0, %v2539_v0 }
0x1917   :  { %2362 = vmatmul.mubr.msk.f32.gmra.mxu0 %vm38_vm4, %v3087_v12 }
0x1918   :  { %2364 = vmatprep.mubr.msk.f32.mxu0 %vm2540_vm0, %v2539_v0 }
0x191b   :  { %2365 = vmatmul.mubr.msk.f32.gmra.mxu0 %vm38_vm4, %v3093_v13 }
0x19c6   :  { %v1744_v7 = vpop.f32.mrf.mxu0 }
0x19c7   :  { %2342 = vmatmul.mubr.msk.f32.vlgmr.msra.gmra.mxu1 %vm38_vm4, %v1744_v7 }
0x19c8   :  { %v2326_v52 = vpop.f32.mrf.mxu0  ;;  %2344 = vmatprep.mubr.msk.f32.mxu1 %vm2540_vm0, %v2539_v0 }
0x19cb   :  { %v1749_v9 = vpop.f32.mrf.mxu0 }
0x19cc   :  { %2345 = vmatmul.mubr.msk.f32.gmra.mxu1 %vm38_vm4, %v1749_v9 }
0x19cd   :  { %v2329_v61 = vpop.f32.mrf.mxu0  ;;  %2347 = vmatprep.mubr.msk.f32.mxu1 %vm2540_vm0, %v2539_v0 }
0x19cf   :  { %v1754_v63 = vpop.f32.mrf.mxu0 }
0x19d0   :  { %2348 = vmatmul.mubr.msk.f32.gmra.mxu1 %vm38_vm4, %v1754_v63 }
0x19d1   :  { %v2332_v58 = vpop.f32.mrf.mxu0 }
0x19d3   :  { %v1921_v10 = vpop.f32.mrf.mxu0 }
0x19d5   :  { %v2360_v11 = vpop.f32.mrf.mxu0 }
0x19d7   :  { %v1926_v12 = vpop.f32.mrf.mxu0 }
0x19d9   :  { %v2363_v13 = vpop.f32.mrf.mxu0 }
0x19db   :  { %v1931_v14 = vpop.f32.mrf.mxu0 }
0x19dd   :  { %v2366_v1 = vpop.f32.mrf.mxu0 }
0x1a87   :  { %v1841_v2 = vpop.f32.mrf.mxu1 }
0x1a88   :  { %v1922_v16 = vadd.f32 %v1921_v10, %v1841_v2 }
0x1a89   :  { %v2343_v3 = vpop.f32.mrf.mxu1 }
0x1a8a   :  { %v1942_v17 = vadd.f32 %v2060_v15, %v1922_v16 }
0x1a8c   :  { %1945 = vst [vmem:[%s3213_s7] sm:$0xff] %v1942_v17  ;;  %v1846_v0 = vpop.f32.mrf.mxu1 }
0x1a8d   :  { %v1927_v4 = vadd.f32 %v1926_v12, %v1846_v0 }
0x1a8e   :  { %v2346_v18 = vpop.f32.mrf.mxu1 }
0x1a8f   :  { %v1943_v19 = vadd.f32 %v2060_v15, %v1927_v4 }
0x1a90   :  { %v1851_v20 = vpop.f32.mrf.mxu1 }
0x1a91   :  { %1946 = vst [vmem:[%s3213_s7 + $0x8] sm:$0xff] %v1943_v19  ;;  %v1932_v21 = vadd.f32 %v1931_v14, %v1851_v20 }
0x1a92   :  { %v2349_v22 = vpop.f32.mrf.mxu1 }
0x1a93   :  { %v1944_v23 = vadd.f32 %v2060_v15, %v1932_v21 }
0x1a95   :  { %1947 = vst [vmem:[%s3213_s7 + $0x10] sm:$0xff] %v1944_v23 }

</bundles_post_ra>
